<compile_context>
chip_gen: v6e
topology: v6e:2x2x1
jax: 0.10.0
libtpu: 0.0.40
codegen_flags: <defaults>
</compile_context>

<pallas_src>
import math
import functools

import jax
import jax.numpy as jnp
from jax.experimental import pallas as pl
from jax.experimental.pallas import tpu as pltpu


_SQRT_2_OVER_PI = math.sqrt(2.0 / math.pi)


# ----------------------------------------------------------------------------
# Kernel: one full transformer block (pre-LN), optionally fusing the
# positional-embedding add (first layer only).
# ----------------------------------------------------------------------------
def transformer_block_kernel(*refs, num_heads, add_pe, ff_chunk, compute_dtype):
    if add_pe:
        x_ref, pe_ref = refs[0], refs[1]
        rest = refs[2:]
    else:
        x_ref, pe_ref = refs[0], None
        rest = refs[1:]
    (wqkv_ref, bqkv_ref, wo_ref, bo_ref,
     ln1_g_ref, ln1_b_ref,
     w1_ref, b1_ref, w2_ref, b2_ref,
     ln2_g_ref, ln2_b_ref,
     o_ref) = rest

    x = x_ref[0].astype(jnp.float32)                      # (S, D)
    if add_pe:
        x = x + pe_ref[...].astype(jnp.float32)           # learned pos. embedding
    S, D = x.shape
    H = num_heads
    dh = D // H
    scale = 1.0 / math.sqrt(dh)

    def layer_norm(h, g_ref, b_ref, eps=1e-6):
        # BERT-pytorch LayerNorm: gamma * (x - mean) / (std + eps) + beta
        # with unbiased (N-1) std and eps added OUTSIDE the sqrt.
        mu = jnp.mean(h, axis=-1, keepdims=True)
        d = h - mu
        var = jnp.sum(d * d, axis=-1, keepdims=True) * (1.0 / (D - 1))
        std = jnp.sqrt(var)
        return g_ref[...] * d / (std + eps) + b_ref[...]

    # ---------------- attention sublayer ----------------
    hn = layer_norm(x, ln1_g_ref, ln1_b_ref)
    hb = jnp.broadcast_to(hn.astype(compute_dtype)[None], (H, S, D))
    # fused per-head Q|K|V projection: (H,S,D) @ (H,D,3dh) -> (H,S,3dh)
    qkv = jnp.einsum("hsd,hdf->hsf", hb, wqkv_ref[...],
                     preferred_element_type=jnp.float32) + bqkv_ref[...]
    q = qkv[:, :, 0:dh].astype(compute_dtype)
    k = qkv[:, :, dh:2 * dh].astype(compute_dtype)
    v = qkv[:, :, 2 * dh:3 * dh].astype(compute_dtype)

    s = jnp.einsum("hqd,hkd->hqk", q, k,
                   preferred_element_type=jnp.float32) * scale      # (H,S,S)
    # mask is all-ones in eval mode -> masked_fill is a no-op
    s = s - jnp.max(s, axis=-1, keepdims=True)
    p = jnp.exp(s)
    p = p * pl.reciprocal(jnp.sum(p, axis=-1, keepdims=True), approx=True)

    ctx = jnp.einsum("hqk,hkd->hqd", p.astype(compute_dtype), v,
                     preferred_element_type=jnp.float32)            # (H,S,dh)
    # output projection with the head-concat folded into a batched matmul
    # followed by a sum over heads (avoids in-kernel transpose/concatenate).
    attn = jnp.einsum("hsd,hdo->hso", ctx.astype(compute_dtype), wo_ref[...],
                      preferred_element_type=jnp.float32)           # (H,S,D)
    x = x + jnp.sum(attn, axis=0) + bo_ref[...]

    # ---------------- feed-forward sublayer (chunked over F) ----------------
    hn = layer_norm(x, ln2_g_ref, ln2_b_ref).astype(compute_dtype)
    F = w1_ref.shape[1]
    acc = jnp.zeros((S, D), jnp.float32)
    for c in range(F // ff_chunk):
        sl = slice(c * ff_chunk, (c + 1) * ff_chunk)
        h1 = jnp.dot(hn, w1_ref[:, sl],
                     preferred_element_type=jnp.float32) + b1_ref[:, sl]
        # GELU (tanh approximation, as in BERT-pytorch's custom GELU)
        g = 0.5 * h1 * (1.0 + jnp.tanh(_SQRT_2_OVER_PI *
                                       (h1 + 0.044715 * h1 * h1 * h1)))
        acc = acc + jnp.dot(g.astype(compute_dtype), w2_ref[sl, :],
                            preferred_element_type=jnp.float32)
    x = x + acc + b2_ref[...]

    o_ref[0] = x.astype(o_ref.dtype)


def transformer_block(x, lp, num_heads, pe=None,
                      single_buffer_weights=True, compute_dtype=jnp.bfloat16):
    B, S, D = x.shape
    H = num_heads
    dh = D // H
    F = lp["w1"].shape[1]
    ff_chunk = 512 if (F > 512 and F % 512 == 0) else F

    ordered = [lp[k] for k in ("wqkv", "bqkv", "wo", "bo",
                               "ln1_g", "ln1_b",
                               "w1", "b1", "w2", "b2",
                               "ln2_g", "ln2_b")]

    def weight_spec(a):
        # Replicated weights: constant index_map across the grid; request
        # single-buffering so they are not double-buffered in VMEM.
        idx = lambda b: (0,) * a.ndim
        if single_buffer_weights and hasattr(pl, "Buffered"):
            try:
                return pl.BlockSpec(a.shape, idx, pipeline_mode=pl.Buffered(1))
            except TypeError:
                pass
        return pl.BlockSpec(a.shape, idx)

    add_pe = pe is not None
    inputs = [x] + ([pe] if add_pe else []) + ordered
    in_specs = [pl.BlockSpec((1, S, D), lambda b: (b, 0, 0))]
    if add_pe:
        in_specs.append(weight_spec(pe))
    in_specs += [weight_spec(a) for a in ordered]

    # Explicit VMEM limit computed from the actual block sizes (+ headroom).
    def nbytes(a):
        return a.size * a.dtype.itemsize
    weight_bytes = sum(nbytes(a) for a in ordered) + (nbytes(pe) if add_pe else 0)
    inter_bytes = (H * S * D * 2            # broadcast bf16 activations
                   + 3 * S * D * 4          # qkv f32
                   + 3 * S * D * 2          # q/k/v bf16
                   + 2 * H * S * S * 4      # scores + probs
                   + H * S * D * 4          # per-head projected outputs
                   + 2 * S * ff_chunk * 4   # FFN chunk intermediates
                   + 8 * S * D * 4)         # residual / LN temporaries
    act_bytes = 4 * S * D * 4               # in/out blocks, double-buffered
    vmem_limit = int(min(max(2 * weight_bytes + inter_bytes + act_bytes + (8 << 20),
                             32 << 20),
                         64 << 20))         # stay within v7x physical VMEM

    return pl.pallas_call(
        functools.partial(transformer_block_kernel,
                          num_heads=num_heads, add_pe=add_pe,
                          ff_chunk=ff_chunk, compute_dtype=compute_dtype),
        out_shape=jax.ShapeDtypeStruct((B, S, D), x.dtype),
        grid=(B,),
        in_specs=in_specs,
        out_specs=pl.BlockSpec((1, S, D), lambda b: (b, 0, 0)),
        compiler_params=pltpu.CompilerParams(
            dimension_semantics=("parallel",),
            vmem_limit_bytes=vmem_limit),
    )(*inputs)


# ----------------------------------------------------------------------------
# Parameter construction (deterministic, mirrors module __init__ shapes)
# ----------------------------------------------------------------------------
def init_params(key, input_dim, max_len, hidden, n_layers, heads, ff_hidden):
    assert input_dim == hidden, "forward pass implies input_dim == hidden"
    keys = jax.random.split(key, 2 + n_layers)
    params = {
        "cls_token": jax.random.normal(keys[0], (1, 1, input_dim), jnp.float32) * 0.02,
        "pe": jax.random.normal(keys[1], (max_len + 1, input_dim), jnp.float32) * 0.02,
        "layers": [],
    }
    for li in range(n_layers):
        lk = jax.random.split(keys[2 + li], 6)
        D, F = hidden, ff_hidden
        layer = {
            "wq": jax.random.normal(lk[0], (D, D), jnp.float32) * 0.02,
            "wk": jax.random.normal(lk[1], (D, D), jnp.float32) * 0.02,
            "wv": jax.random.normal(lk[2], (D, D), jnp.float32) * 0.02,
            "wo": jax.random.normal(lk[3], (D, D), jnp.float32) * 0.02,
            "bq": jnp.zeros((1, D), jnp.float32),
            "bk": jnp.zeros((1, D), jnp.float32),
            "bv": jnp.zeros((1, D), jnp.float32),
            "bo": jnp.zeros((1, D), jnp.float32),
            "ln1_g": jnp.ones((1, D), jnp.float32),
            "ln1_b": jnp.zeros((1, D), jnp.float32),
            "w1": jax.random.normal(lk[4], (D, F), jnp.float32) * 0.02,
            "b1": jnp.zeros((1, F), jnp.float32),
            "w2": jax.random.normal(lk[5], (F, D), jnp.float32) * 0.02,
            "b2": jnp.zeros((1, D), jnp.float32),
            "ln2_g": jnp.ones((1, D), jnp.float32),
            "ln2_b": jnp.zeros((1, D), jnp.float32),
        }
        params["layers"].append(layer)
    return params


def pack_params(params, num_heads, compute_dtype=jnp.bfloat16):
    """Host-side: fuse/reshape weights into head-major layouts and cast the
    matmul weights to bf16 (biases / LN params stay f32)."""
    packed = {"cls_token": params["cls_token"], "pe": params["pe"], "layers": []}
    for p in params["layers"]:
        D = p["wq"].shape[0]
        assert D % num_heads == 0
        dh = D // num_heads

        def heads_cols(w):                     # (D, D) -> (H, D, dh)
            return jnp.transpose(w.reshape(D, num_heads, dh), (1, 0, 2))

        wqkv = jnp.concatenate(
            [heads_cols(p["wq"]), heads_cols(p["wk"]), heads_cols(p["wv"])],
            axis=-1).astype(compute_dtype)                       # (H, D, 3dh)
        bqkv = jnp.concatenate(
            [p["bq"].reshape(num_heads, 1, dh),
             p["bk"].reshape(num_heads, 1, dh),
             p["bv"].reshape(num_heads, 1, dh)],
            axis=-1).astype(jnp.float32)                         # (H, 1, 3dh)
        wo = p["wo"].reshape(num_heads, dh, D).astype(compute_dtype)  # (H, dh, D)

        packed["layers"].append({
            "wqkv": wqkv, "bqkv": bqkv, "wo": wo, "bo": p["bo"],
            "ln1_g": p["ln1_g"], "ln1_b": p["ln1_b"],
            "w1": p["w1"].astype(compute_dtype), "b1": p["b1"],
            "w2": p["w2"].astype(compute_dtype), "b2": p["b2"],
            "ln2_g": p["ln2_g"], "ln2_b": p["ln2_b"],
        })
    return packed


# ----------------------------------------------------------------------------
# BERT forward (eval mode): glue in plain JAX, hot path in the Pallas kernel
# ----------------------------------------------------------------------------
def bert_forward(input_vectors, packed, num_heads, single_buffer_weights=True):
    B, L, D = input_vectors.shape
    cls = jnp.broadcast_to(packed["cls_token"], (B, 1, D)).astype(input_vectors.dtype)
    x = jnp.concatenate([cls, input_vectors], axis=1)            # (B, L+1, D)
    pe = packed["pe"][: x.shape[1]]                              # (S, D)

    layers = packed["layers"]
    if not layers:                       # degenerate case: plain XLA add
        return x + pe[None], None

    # positional-embedding add fused into the first block (saves an HBM trip)
    x = transformer_block(x, layers[0], num_heads, pe=pe,
                          single_buffer_weights=single_buffer_weights)
    for lp in layers[1:]:
        x = transformer_block(x, lp, num_heads,
                              single_buffer_weights=single_buffer_weights)
    return x, None                       # (hidden_states, sample) -- eval mode


if __name__ == "__main__":
    # small shapes consistent with the module's forward
    BATCH = 2
    MAX_LEN = 7          # sequence length before the cls token -> S = 8
    HIDDEN = 32          # input_dim == hidden (required by the forward pass)
    N_LAYERS = 2
    HEADS = 4
    FF_HIDDEN = 4 * HIDDEN

    key = jax.random.PRNGKey(0)
    pkey, xkey = jax.random.split(key)
    raw_params = init_params(pkey, HIDDEN, MAX_LEN, HIDDEN, N_LAYERS, HEADS, FF_HIDDEN)
    packed = pack_params(raw_params, HEADS)
    input_vectors = jax.random.normal(xkey, (BATCH, MAX_LEN, HIDDEN), jnp.float32)

    def run(single_buffer_weights):
        out, sample = bert_forward(input_vectors, packed, HEADS,
                                   single_buffer_weights=single_buffer_weights)
        return jax.block_until_ready(out), sample

    try:
        out, sample = run(True)
    except Exception:
        # Fallback: if this JAX build rejects pipeline_mode=pl.Buffered(1) on the
        # top-level pallas_call, rerun with default (double-buffered) weights.
        out, sample = run(False)

    assert out.shape == (BATCH, MAX_LEN + 1, HIDDEN)
    assert sample is None
    assert bool(jnp.all(jnp.isfinite(out)))
    print("KERNEL_OK")
</pallas_src>

<mosaic_0001>
module attributes {stable_mosaic.version = 11 : i64} {
  func.func @transformer_block_kernel(%arg0: i32, %arg1: memref<1x8x32xf32, #tpu.memory_space<vmem>>, %arg2: memref<8x32xf32, #tpu.memory_space<vmem>>, %arg3: memref<4x32x24xbf16, #tpu.memory_space<vmem>>, %arg4: memref<4x1x24xf32, #tpu.memory_space<vmem>>, %arg5: memref<4x8x32xbf16, #tpu.memory_space<vmem>>, %arg6: memref<1x32xf32, #tpu.memory_space<vmem>>, %arg7: memref<1x32xf32, #tpu.memory_space<vmem>>, %arg8: memref<1x32xf32, #tpu.memory_space<vmem>>, %arg9: memref<32x128xbf16, #tpu.memory_space<vmem>>, %arg10: memref<1x128xf32, #tpu.memory_space<vmem>>, %arg11: memref<128x32xbf16, #tpu.memory_space<vmem>>, %arg12: memref<1x32xf32, #tpu.memory_space<vmem>>, %arg13: memref<1x32xf32, #tpu.memory_space<vmem>>, %arg14: memref<1x32xf32, #tpu.memory_space<vmem>>, %arg15: memref<1x8x32xf32, #tpu.memory_space<vmem>>) attributes {dimension_semantics = [#tpu.dimension_semantics<parallel>], iteration_bounds = array<i64: 2>, scalar_prefetch = 0 : i64, scratch_operands = 0 : i64, tpu.core_type = #tpu.core_type<tc>, window_params = [{transform_indices = @transform_0, window_bounds = array<i64: 1, 8, 32>}, {pipeline_mode = #tpu.pipeline_mode<synchronous>, transform_indices = @transform_1, window_bounds = array<i64: 8, 32>}, {pipeline_mode = #tpu.pipeline_mode<synchronous>, transform_indices = @transform_2, window_bounds = array<i64: 4, 32, 24>}, {pipeline_mode = #tpu.pipeline_mode<synchronous>, transform_indices = @transform_3, window_bounds = array<i64: 4, 1, 24>}, {pipeline_mode = #tpu.pipeline_mode<synchronous>, transform_indices = @transform_4, window_bounds = array<i64: 4, 8, 32>}, {pipeline_mode = #tpu.pipeline_mode<synchronous>, transform_indices = @transform_5, window_bounds = array<i64: 1, 32>}, {pipeline_mode = #tpu.pipeline_mode<synchronous>, transform_indices = @transform_6, window_bounds = array<i64: 1, 32>}, {pipeline_mode = #tpu.pipeline_mode<synchronous>, transform_indices = @transform_7, window_bounds = array<i64: 1, 32>}, {pipeline_mode = #tpu.pipeline_mode<synchronous>, transform_indices = @transform_8, window_bounds = array<i64: 32, 128>}, {pipeline_mode = #tpu.pipeline_mode<synchronous>, transform_indices = @transform_9, window_bounds = array<i64: 1, 128>}, {pipeline_mode = #tpu.pipeline_mode<synchronous>, transform_indices = @transform_10, window_bounds = array<i64: 128, 32>}, {pipeline_mode = #tpu.pipeline_mode<synchronous>, transform_indices = @transform_11, window_bounds = array<i64: 1, 32>}, {pipeline_mode = #tpu.pipeline_mode<synchronous>, transform_indices = @transform_12, window_bounds = array<i64: 1, 32>}, {pipeline_mode = #tpu.pipeline_mode<synchronous>, transform_indices = @transform_13, window_bounds = array<i64: 1, 32>}, {transform_indices = @transform_14, window_bounds = array<i64: 1, 8, 32>}]} {
    %c0 = arith.constant 0 : index
    %c0_0 = arith.constant 0 : index
    %c0_1 = arith.constant 0 : index
    %0 = vector.load %arg1[%c0, %c0_0, %c0_1] : memref<1x8x32xf32, #tpu.memory_space<vmem>>, vector<1x8x32xf32>
    %1 = vector.shape_cast %0 : vector<1x8x32xf32> to vector<8x32xf32>
    %c0_2 = arith.constant 0 : index
    %c0_3 = arith.constant 0 : index
    %2 = vector.load %arg2[%c0_2, %c0_3] : memref<8x32xf32, #tpu.memory_space<vmem>>, vector<8x32xf32>
    %3 = arith.addf %1, %2 : vector<8x32xf32>
    %cst = arith.constant dense<0.000000e+00> : vector<8xf32>
    %4 = vector.multi_reduction <add>, %3, %cst [1] : vector<8x32xf32> to vector<8xf32>
    %5 = vector.shape_cast %4 : vector<8xf32> to vector<8x1xf32>
    %cst_4 = arith.constant 3.200000e+01 : f32
    %6 = vector.broadcast %cst_4 : f32 to vector<8x1xf32>
    %7 = arith.divf %5, %6 : vector<8x1xf32>
    %8 = vector.broadcast %7 : vector<8x1xf32> to vector<8x32xf32>
    %9 = arith.subf %3, %8 : vector<8x32xf32>
    %10 = arith.mulf %9, %9 : vector<8x32xf32>
    %cst_5 = arith.constant dense<0.000000e+00> : vector<8xf32>
    %11 = vector.multi_reduction <add>, %10, %cst_5 [1] : vector<8x32xf32> to vector<8xf32>
    %12 = vector.shape_cast %11 : vector<8xf32> to vector<8x1xf32>
    %cst_6 = arith.constant 0.0322580636 : f32
    %13 = vector.broadcast %cst_6 : f32 to vector<8x1xf32>
    %14 = arith.mulf %12, %13 : vector<8x1xf32>
    %15 = math.sqrt %14 : vector<8x1xf32>
    %c0_7 = arith.constant 0 : index
    %c0_8 = arith.constant 0 : index
    %16 = vector.load %arg7[%c0_7, %c0_8] : memref<1x32xf32, #tpu.memory_space<vmem>>, vector<1x32xf32>
    %17 = vector.broadcast %16 : vector<1x32xf32> to vector<8x32xf32>
    %18 = arith.mulf %17, %9 : vector<8x32xf32>
    %cst_9 = arith.constant 9.99999997E-7 : f32
    %19 = vector.broadcast %cst_9 : f32 to vector<8x1xf32>
    %20 = arith.addf %15, %19 : vector<8x1xf32>
    %21 = vector.broadcast %20 : vector<8x1xf32> to vector<8x32xf32>
    %22 = arith.divf %18, %21 : vector<8x32xf32>
    %c0_10 = arith.constant 0 : index
    %c0_11 = arith.constant 0 : index
    %23 = vector.load %arg8[%c0_10, %c0_11] : memref<1x32xf32, #tpu.memory_space<vmem>>, vector<1x32xf32>
    %24 = vector.broadcast %23 : vector<1x32xf32> to vector<8x32xf32>
    %25 = arith.addf %22, %24 : vector<8x32xf32>
    %26 = arith.truncf %25 : vector<8x32xf32> to vector<8x32xbf16>
    %27 = vector.shape_cast %26 : vector<8x32xbf16> to vector<1x8x32xbf16>
    %28 = vector.shape_cast %27 : vector<1x8x32xbf16> to vector<1x8x32xbf16>
    %29 = vector.broadcast %28 : vector<1x8x32xbf16> to vector<4x8x32xbf16>
    %c0_12 = arith.constant 0 : index
    %c0_13 = arith.constant 0 : index
    %c0_14 = arith.constant 0 : index
    %30 = vector.load %arg3[%c0_12, %c0_13, %c0_14] : memref<4x32x24xbf16, #tpu.memory_space<vmem>>, vector<4x32x24xbf16>
    "tpu.trace_start"() <{level = 10 : i32, message = "hsd,hdf->hsf"}> : () -> ()
    %cst_15 = arith.constant dense<0.000000e+00> : vector<4x8x24xf32>
    %31 = tpu.matmul %29, %30, %cst_15 {dimension_numbers = #tpu.dot_dimension_numbers<[2], [1], [1], [2], [0, 0, 0, 1, 1, 2], [0], [0]>} : vector<4x8x32xbf16>, vector<4x32x24xbf16>, vector<4x8x24xf32> -> vector<4x8x24xf32>
    "tpu.trace_stop"() : () -> ()
    %c0_16 = arith.constant 0 : index
    %c0_17 = arith.constant 0 : index
    %c0_18 = arith.constant 0 : index
    %32 = vector.load %arg4[%c0_16, %c0_17, %c0_18] : memref<4x1x24xf32, #tpu.memory_space<vmem>>, vector<4x1x24xf32>
    %33 = vector.broadcast %32 : vector<4x1x24xf32> to vector<4x8x24xf32>
    %34 = arith.addf %31, %33 : vector<4x8x24xf32>
    %35 = vector.extract_strided_slice %34 {offsets = [0, 0, 0], sizes = [4, 8, 8], strides = [1, 1, 1]} : vector<4x8x24xf32> to vector<4x8x8xf32>
    %36 = arith.truncf %35 : vector<4x8x8xf32> to vector<4x8x8xbf16>
    %37 = vector.extract_strided_slice %34 {offsets = [0, 0, 8], sizes = [4, 8, 8], strides = [1, 1, 1]} : vector<4x8x24xf32> to vector<4x8x8xf32>
    %38 = arith.truncf %37 : vector<4x8x8xf32> to vector<4x8x8xbf16>
    %39 = vector.extract_strided_slice %34 {offsets = [0, 0, 16], sizes = [4, 8, 8], strides = [1, 1, 1]} : vector<4x8x24xf32> to vector<4x8x8xf32>
    %40 = arith.truncf %39 : vector<4x8x8xf32> to vector<4x8x8xbf16>
    "tpu.trace_start"() <{level = 10 : i32, message = "hqd,hkd->hqk"}> : () -> ()
    %cst_19 = arith.constant dense<0.000000e+00> : vector<4x8x8xf32>
    %41 = tpu.matmul %36, %38, %cst_19 {dimension_numbers = #tpu.dot_dimension_numbers<[2], [2], [1], [1], [0, 0, 0, 1, 1, 1], [0], [0]>} : vector<4x8x8xbf16>, vector<4x8x8xbf16>, vector<4x8x8xf32> -> vector<4x8x8xf32>
    "tpu.trace_stop"() : () -> ()
    %cst_20 = arith.constant 0.353553385 : f32
    %42 = vector.broadcast %cst_20 : f32 to vector<4x8x8xf32>
    %43 = arith.mulf %41, %42 : vector<4x8x8xf32>
    %cst_21 = arith.constant dense<0xFF800000> : vector<4x8xf32>
    %44 = vector.multi_reduction <maximumf>, %43, %cst_21 [2] : vector<4x8x8xf32> to vector<4x8xf32>
    %45 = vector.shape_cast %44 : vector<4x8xf32> to vector<4x8x1xf32>
    %46 = vector.broadcast %45 : vector<4x8x1xf32> to vector<4x8x8xf32>
    %47 = arith.subf %43, %46 : vector<4x8x8xf32>
    %48 = math.exp %47 : vector<4x8x8xf32>
    %cst_22 = arith.constant dense<0.000000e+00> : vector<4x8xf32>
    %49 = vector.multi_reduction <add>, %48, %cst_22 [2] : vector<4x8x8xf32> to vector<4x8xf32>
    %50 = vector.shape_cast %49 : vector<4x8xf32> to vector<4x8x1xf32>
    %51 = tpu.reciprocal %50 {approx = true} : vector<4x8x1xf32> -> vector<4x8x1xf32>
    %52 = vector.broadcast %51 : vector<4x8x1xf32> to vector<4x8x8xf32>
    %53 = arith.mulf %48, %52 : vector<4x8x8xf32>
    %54 = arith.truncf %53 : vector<4x8x8xf32> to vector<4x8x8xbf16>
    "tpu.trace_start"() <{level = 10 : i32, message = "hqk,hkd->hqd"}> : () -> ()
    %cst_23 = arith.constant dense<0.000000e+00> : vector<4x8x8xf32>
    %55 = tpu.matmul %54, %40, %cst_23 {dimension_numbers = #tpu.dot_dimension_numbers<[2], [1], [1], [2], [0, 0, 0, 1, 1, 2], [0], [0]>} : vector<4x8x8xbf16>, vector<4x8x8xbf16>, vector<4x8x8xf32> -> vector<4x8x8xf32>
    "tpu.trace_stop"() : () -> ()
    %56 = arith.truncf %55 : vector<4x8x8xf32> to vector<4x8x8xbf16>
    %c0_24 = arith.constant 0 : index
    %c0_25 = arith.constant 0 : index
    %c0_26 = arith.constant 0 : index
    %57 = vector.load %arg5[%c0_24, %c0_25, %c0_26] : memref<4x8x32xbf16, #tpu.memory_space<vmem>>, vector<4x8x32xbf16>
    "tpu.trace_start"() <{level = 10 : i32, message = "hsd,hdo->hso"}> : () -> ()
    %cst_27 = arith.constant dense<0.000000e+00> : vector<4x8x32xf32>
    %58 = tpu.matmul %56, %57, %cst_27 {dimension_numbers = #tpu.dot_dimension_numbers<[2], [1], [1], [2], [0, 0, 0, 1, 1, 2], [0], [0]>} : vector<4x8x8xbf16>, vector<4x8x32xbf16>, vector<4x8x32xf32> -> vector<4x8x32xf32>
    "tpu.trace_stop"() : () -> ()
    %cst_28 = arith.constant dense<0.000000e+00> : vector<8x32xf32>
    %59 = vector.multi_reduction <add>, %58, %cst_28 [0] : vector<4x8x32xf32> to vector<8x32xf32>
    %60 = arith.addf %3, %59 : vector<8x32xf32>
    %c0_29 = arith.constant 0 : index
    %c0_30 = arith.constant 0 : index
    %61 = vector.load %arg6[%c0_29, %c0_30] : memref<1x32xf32, #tpu.memory_space<vmem>>, vector<1x32xf32>
    %62 = vector.broadcast %61 : vector<1x32xf32> to vector<8x32xf32>
    %63 = arith.addf %60, %62 : vector<8x32xf32>
    %cst_31 = arith.constant dense<0.000000e+00> : vector<8xf32>
    %64 = vector.multi_reduction <add>, %63, %cst_31 [1] : vector<8x32xf32> to vector<8xf32>
    %65 = vector.shape_cast %64 : vector<8xf32> to vector<8x1xf32>
    %cst_32 = arith.constant 3.200000e+01 : f32
    %66 = vector.broadcast %cst_32 : f32 to vector<8x1xf32>
    %67 = arith.divf %65, %66 : vector<8x1xf32>
    %68 = vector.broadcast %67 : vector<8x1xf32> to vector<8x32xf32>
    %69 = arith.subf %63, %68 : vector<8x32xf32>
    %70 = arith.mulf %69, %69 : vector<8x32xf32>
    %cst_33 = arith.constant dense<0.000000e+00> : vector<8xf32>
    %71 = vector.multi_reduction <add>, %70, %cst_33 [1] : vector<8x32xf32> to vector<8xf32>
    %72 = vector.shape_cast %71 : vector<8xf32> to vector<8x1xf32>
    %cst_34 = arith.constant 0.0322580636 : f32
    %73 = vector.broadcast %cst_34 : f32 to vector<8x1xf32>
    %74 = arith.mulf %72, %73 : vector<8x1xf32>
    %75 = math.sqrt %74 : vector<8x1xf32>
    %c0_35 = arith.constant 0 : index
    %c0_36 = arith.constant 0 : index
    %76 = vector.load %arg13[%c0_35, %c0_36] : memref<1x32xf32, #tpu.memory_space<vmem>>, vector<1x32xf32>
    %77 = vector.broadcast %76 : vector<1x32xf32> to vector<8x32xf32>
    %78 = arith.mulf %77, %69 : vector<8x32xf32>
    %cst_37 = arith.constant 9.99999997E-7 : f32
    %79 = vector.broadcast %cst_37 : f32 to vector<8x1xf32>
    %80 = arith.addf %75, %79 : vector<8x1xf32>
    %81 = vector.broadcast %80 : vector<8x1xf32> to vector<8x32xf32>
    %82 = arith.divf %78, %81 : vector<8x32xf32>
    %c0_38 = arith.constant 0 : index
    %c0_39 = arith.constant 0 : index
    %83 = vector.load %arg14[%c0_38, %c0_39] : memref<1x32xf32, #tpu.memory_space<vmem>>, vector<1x32xf32>
    %84 = vector.broadcast %83 : vector<1x32xf32> to vector<8x32xf32>
    %85 = arith.addf %82, %84 : vector<8x32xf32>
    %86 = arith.truncf %85 : vector<8x32xf32> to vector<8x32xbf16>
    %cst_40 = arith.constant 0.000000e+00 : f32
    %87 = vector.broadcast %cst_40 : f32 to vector<8x32xf32>
    %c0_41 = arith.constant 0 : index
    %c0_42 = arith.constant 0 : index
    %88 = vector.load %arg9[%c0_41, %c0_42] : memref<32x128xbf16, #tpu.memory_space<vmem>>, vector<32x128xbf16>
    %cst_43 = arith.constant dense<0.000000e+00> : vector<8x128xf32>
    %89 = tpu.matmul %86, %88, %cst_43 {dimension_numbers = #tpu.dot_dimension_numbers<[1], [0], [0], [1], [0, 0, 1, 1], [], []>} : vector<8x32xbf16>, vector<32x128xbf16>, vector<8x128xf32> -> vector<8x128xf32>
    %c0_44 = arith.constant 0 : index
    %c0_45 = arith.constant 0 : index
    %90 = vector.load %arg10[%c0_44, %c0_45] : memref<1x128xf32, #tpu.memory_space<vmem>>, vector<1x128xf32>
    %91 = vector.broadcast %90 : vector<1x128xf32> to vector<8x128xf32>
    %92 = arith.addf %89, %91 : vector<8x128xf32>
    %cst_46 = arith.constant 5.000000e-01 : f32
    %93 = vector.broadcast %cst_46 : f32 to vector<8x128xf32>
    %94 = arith.mulf %93, %92 : vector<8x128xf32>
    %cst_47 = arith.constant 4.471500e-02 : f32
    %95 = vector.broadcast %cst_47 : f32 to vector<8x128xf32>
    %96 = arith.mulf %95, %92 : vector<8x128xf32>
    %97 = arith.mulf %96, %92 : vector<8x128xf32>
    %98 = arith.mulf %97, %92 : vector<8x128xf32>
    %99 = arith.addf %92, %98 : vector<8x128xf32>
    %cst_48 = arith.constant 0.797884583 : f32
    %100 = vector.broadcast %cst_48 : f32 to vector<8x128xf32>
    %101 = arith.mulf %100, %99 : vector<8x128xf32>
    %102 = math.tanh %101 : vector<8x128xf32>
    %cst_49 = arith.constant 1.000000e+00 : f32
    %103 = vector.broadcast %cst_49 : f32 to vector<8x128xf32>
    %104 = arith.addf %103, %102 : vector<8x128xf32>
    %105 = arith.mulf %94, %104 : vector<8x128xf32>
    %106 = arith.truncf %105 : vector<8x128xf32> to vector<8x128xbf16>
    %c0_50 = arith.constant 0 : index
    %c0_51 = arith.constant 0 : index
    %107 = vector.load %arg11[%c0_50, %c0_51] : memref<128x32xbf16, #tpu.memory_space<vmem>>, vector<128x32xbf16>
    %cst_52 = arith.constant dense<0.000000e+00> : vector<8x32xf32>
    %108 = tpu.matmul %106, %107, %cst_52 {dimension_numbers = #tpu.dot_dimension_numbers<[1], [0], [0], [1], [0, 0, 1, 1], [], []>} : vector<8x128xbf16>, vector<128x32xbf16>, vector<8x32xf32> -> vector<8x32xf32>
    %109 = arith.addf %87, %108 : vector<8x32xf32>
    %110 = arith.addf %63, %109 : vector<8x32xf32>
    %c0_53 = arith.constant 0 : index
    %c0_54 = arith.constant 0 : index
    %111 = vector.load %arg12[%c0_53, %c0_54] : memref<1x32xf32, #tpu.memory_space<vmem>>, vector<1x32xf32>
    %112 = vector.broadcast %111 : vector<1x32xf32> to vector<8x32xf32>
    %113 = arith.addf %110, %112 : vector<8x32xf32>
    %c0_55 = arith.constant 0 : index
    %c0_56 = arith.constant 0 : index
    %c0_57 = arith.constant 0 : index
    %114 = vector.load %arg15[%c0_55, %c0_56, %c0_57] : memref<1x8x32xf32, #tpu.memory_space<vmem>>, vector<1x8x32xf32>
    %115 = vector.shape_cast %114 : vector<1x8x32xf32> to vector<8x32xf32>
    %116 = vector.shape_cast %113 : vector<8x32xf32> to vector<1x8x32xf32>
    tpu.vector_store %arg15[%c0_55, %c0_56, %c0_57], %116 {strides = array<i32>} : memref<1x8x32xf32, #tpu.memory_space<vmem>>, vector<1x8x32xf32>,
    return
  }
  func.func @transform_0(%arg0: i32) -> (i32, i32, i32) {
    %c0_i32 = arith.constant 0 : i32
    %c0_i32_0 = arith.constant 0 : i32
    %c0_i32_1 = arith.constant 0 : i32
    return %arg0, %c0_i32, %c0_i32_0 : i32, i32, i32
  }
  func.func @transform_1(%arg0: i32) -> (i32, i32) {
    %c0_i32 = arith.constant 0 : i32
    %c0_i32_0 = arith.constant 0 : i32
    %c0_i32_1 = arith.constant 0 : i32
    return %c0_i32, %c0_i32_0 : i32, i32
  }
  func.func @transform_2(%arg0: i32) -> (i32, i32, i32) {
    %c0_i32 = arith.constant 0 : i32
    %c0_i32_0 = arith.constant 0 : i32
    %c0_i32_1 = arith.constant 0 : i32
    %c0_i32_2 = arith.constant 0 : i32
    return %c0_i32, %c0_i32_0, %c0_i32_1 : i32, i32, i32
  }
  func.func @transform_3(%arg0: i32) -> (i32, i32, i32) {
    %c0_i32 = arith.constant 0 : i32
    %c0_i32_0 = arith.constant 0 : i32
    %c0_i32_1 = arith.constant 0 : i32
    %c0_i32_2 = arith.constant 0 : i32
    return %c0_i32, %c0_i32_0, %c0_i32_1 : i32, i32, i32
  }
  func.func @transform_4(%arg0: i32) -> (i32, i32, i32) {
    %c0_i32 = arith.constant 0 : i32
    %c0_i32_0 = arith.constant 0 : i32
    %c0_i32_1 = arith.constant 0 : i32
    %c0_i32_2 = arith.constant 0 : i32
    return %c0_i32, %c0_i32_0, %c0_i32_1 : i32, i32, i32
  }
  func.func @transform_5(%arg0: i32) -> (i32, i32) {
    %c0_i32 = arith.constant 0 : i32
    %c0_i32_0 = arith.constant 0 : i32
    %c0_i32_1 = arith.constant 0 : i32
    return %c0_i32, %c0_i32_0 : i32, i32
  }
  func.func @transform_6(%arg0: i32) -> (i32, i32) {
    %c0_i32 = arith.constant 0 : i32
    %c0_i32_0 = arith.constant 0 : i32
    %c0_i32_1 = arith.constant 0 : i32
    return %c0_i32, %c0_i32_0 : i32, i32
  }
  func.func @transform_7(%arg0: i32) -> (i32, i32) {
    %c0_i32 = arith.constant 0 : i32
    %c0_i32_0 = arith.constant 0 : i32
    %c0_i32_1 = arith.constant 0 : i32
    return %c0_i32, %c0_i32_0 : i32, i32
  }
  func.func @transform_8(%arg0: i32) -> (i32, i32) {
    %c0_i32 = arith.constant 0 : i32
    %c0_i32_0 = arith.constant 0 : i32
    %c0_i32_1 = arith.constant 0 : i32
    return %c0_i32, %c0_i32_0 : i32, i32
  }
  func.func @transform_9(%arg0: i32) -> (i32, i32) {
    %c0_i32 = arith.constant 0 : i32
    %c0_i32_0 = arith.constant 0 : i32
    %c0_i32_1 = arith.constant 0 : i32
    return %c0_i32, %c0_i32_0 : i32, i32
  }
  func.func @transform_10(%arg0: i32) -> (i32, i32) {
    %c0_i32 = arith.constant 0 : i32
    %c0_i32_0 = arith.constant 0 : i32
    %c0_i32_1 = arith.constant 0 : i32
    return %c0_i32, %c0_i32_0 : i32, i32
  }
  func.func @transform_11(%arg0: i32) -> (i32, i32) {
    %c0_i32 = arith.constant 0 : i32
    %c0_i32_0 = arith.constant 0 : i32
    %c0_i32_1 = arith.constant 0 : i32
    return %c0_i32, %c0_i32_0 : i32, i32
  }
  func.func @transform_12(%arg0: i32) -> (i32, i32) {
    %c0_i32 = arith.constant 0 : i32
    %c0_i32_0 = arith.constant 0 : i32
    %c0_i32_1 = arith.constant 0 : i32
    return %c0_i32, %c0_i32_0 : i32, i32
  }
  func.func @transform_13(%arg0: i32) -> (i32, i32) {
    %c0_i32 = arith.constant 0 : i32
    %c0_i32_0 = arith.constant 0 : i32
    %c0_i32_1 = arith.constant 0 : i32
    return %c0_i32, %c0_i32_0 : i32, i32
  }
  func.func @transform_14(%arg0: i32) -> (i32, i32, i32) {
    %c0_i32 = arith.constant 0 : i32
    %c0_i32_0 = arith.constant 0 : i32
    %c0_i32_1 = arith.constant 0 : i32
    return %arg0, %c0_i32, %c0_i32_0 : i32, i32, i32
  }
}

module attributes {stable_mosaic.version = 11 : i64} {
  func.func @transformer_block_kernel(%arg0: i32, %arg1: memref<1x8x32xf32, #tpu.memory_space<vmem>>, %arg2: memref<8x32xf32, #tpu.memory_space<vmem>>, %arg3: memref<4x32x24xbf16, #tpu.memory_space<vmem>>, %arg4: memref<4x1x24xf32, #tpu.memory_space<vmem>>, %arg5: memref<4x8x32xbf16, #tpu.memory_space<vmem>>, %arg6: memref<1x32xf32, #tpu.memory_space<vmem>>, %arg7: memref<1x32xf32, #tpu.memory_space<vmem>>, %arg8: memref<1x32xf32, #tpu.memory_space<vmem>>, %arg9: memref<32x128xbf16, #tpu.memory_space<vmem>>, %arg10: memref<1x128xf32, #tpu.memory_space<vmem>>, %arg11: memref<128x32xbf16, #tpu.memory_space<vmem>>, %arg12: memref<1x32xf32, #tpu.memory_space<vmem>>, %arg13: memref<1x32xf32, #tpu.memory_space<vmem>>, %arg14: memref<1x32xf32, #tpu.memory_space<vmem>>, %arg15: memref<1x8x32xf32, #tpu.memory_space<vmem>>) attributes {dimension_semantics = [#tpu.dimension_semantics<parallel>], iteration_bounds = array<i64: 2>, scalar_prefetch = 0 : i64, scratch_operands = 0 : i64, tpu.core_type = #tpu.core_type<tc>, window_params = [{transform_indices = @transform_0, window_bounds = array<i64: 1, 8, 32>}, {pipeline_mode = #tpu.pipeline_mode<synchronous>, transform_indices = @transform_1, window_bounds = array<i64: 8, 32>}, {pipeline_mode = #tpu.pipeline_mode<synchronous>, transform_indices = @transform_2, window_bounds = array<i64: 4, 32, 24>}, {pipeline_mode = #tpu.pipeline_mode<synchronous>, transform_indices = @transform_3, window_bounds = array<i64: 4, 1, 24>}, {pipeline_mode = #tpu.pipeline_mode<synchronous>, transform_indices = @transform_4, window_bounds = array<i64: 4, 8, 32>}, {pipeline_mode = #tpu.pipeline_mode<synchronous>, transform_indices = @transform_5, window_bounds = array<i64: 1, 32>}, {pipeline_mode = #tpu.pipeline_mode<synchronous>, transform_indices = @transform_6, window_bounds = array<i64: 1, 32>}, {pipeline_mode = #tpu.pipeline_mode<synchronous>, transform_indices = @transform_7, window_bounds = array<i64: 1, 32>}, {pipeline_mode = #tpu.pipeline_mode<synchronous>, transform_indices = @transform_8, window_bounds = array<i64: 32, 128>}, {pipeline_mode = #tpu.pipeline_mode<synchronous>, transform_indices = @transform_9, window_bounds = array<i64: 1, 128>}, {pipeline_mode = #tpu.pipeline_mode<synchronous>, transform_indices = @transform_10, window_bounds = array<i64: 128, 32>}, {pipeline_mode = #tpu.pipeline_mode<synchronous>, transform_indices = @transform_11, window_bounds = array<i64: 1, 32>}, {pipeline_mode = #tpu.pipeline_mode<synchronous>, transform_indices = @transform_12, window_bounds = array<i64: 1, 32>}, {pipeline_mode = #tpu.pipeline_mode<synchronous>, transform_indices = @transform_13, window_bounds = array<i64: 1, 32>}, {transform_indices = @transform_14, window_bounds = array<i64: 1, 8, 32>}]} {
    %c0 = arith.constant 0 : index
    %c0_0 = arith.constant 0 : index
    %c0_1 = arith.constant 0 : index
    %0 = vector.load %arg1[%c0, %c0_0, %c0_1] : memref<1x8x32xf32, #tpu.memory_space<vmem>>, vector<1x8x32xf32>
    %1 = vector.shape_cast %0 : vector<1x8x32xf32> to vector<8x32xf32>
    %c0_2 = arith.constant 0 : index
    %c0_3 = arith.constant 0 : index
    %2 = vector.load %arg2[%c0_2, %c0_3] : memref<8x32xf32, #tpu.memory_space<vmem>>, vector<8x32xf32>
    %3 = arith.addf %1, %2 : vector<8x32xf32>
    %cst = arith.constant dense<0.000000e+00> : vector<8xf32>
    %4 = vector.multi_reduction <add>, %3, %cst [1] : vector<8x32xf32> to vector<8xf32>
    %5 = vector.shape_cast %4 : vector<8xf32> to vector<8x1xf32>
    %cst_4 = arith.constant 3.200000e+01 : f32
    %6 = vector.broadcast %cst_4 : f32 to vector<8x1xf32>
    %7 = arith.divf %5, %6 : vector<8x1xf32>
    %8 = vector.broadcast %7 : vector<8x1xf32> to vector<8x32xf32>
    %9 = arith.subf %3, %8 : vector<8x32xf32>
    %10 = arith.mulf %9, %9 : vector<8x32xf32>
    %cst_5 = arith.constant dense<0.000000e+00> : vector<8xf32>
    %11 = vector.multi_reduction <add>, %10, %cst_5 [1] : vector<8x32xf32> to vector<8xf32>
    %12 = vector.shape_cast %11 : vector<8xf32> to vector<8x1xf32>
    %cst_6 = arith.constant 0.0322580636 : f32
    %13 = vector.broadcast %cst_6 : f32 to vector<8x1xf32>
    %14 = arith.mulf %12, %13 : vector<8x1xf32>
    %15 = math.sqrt %14 : vector<8x1xf32>
    %c0_7 = arith.constant 0 : index
    %c0_8 = arith.constant 0 : index
    %16 = vector.load %arg7[%c0_7, %c0_8] : memref<1x32xf32, #tpu.memory_space<vmem>>, vector<1x32xf32>
    %17 = vector.broadcast %16 : vector<1x32xf32> to vector<8x32xf32>
    %18 = arith.mulf %17, %9 : vector<8x32xf32>
    %cst_9 = arith.constant 9.99999997E-7 : f32
    %19 = vector.broadcast %cst_9 : f32 to vector<8x1xf32>
    %20 = arith.addf %15, %19 : vector<8x1xf32>
    %21 = vector.broadcast %20 : vector<8x1xf32> to vector<8x32xf32>
    %22 = arith.divf %18, %21 : vector<8x32xf32>
    %c0_10 = arith.constant 0 : index
    %c0_11 = arith.constant 0 : index
    %23 = vector.load %arg8[%c0_10, %c0_11] : memref<1x32xf32, #tpu.memory_space<vmem>>, vector<1x32xf32>
    %24 = vector.broadcast %23 : vector<1x32xf32> to vector<8x32xf32>
    %25 = arith.addf %22, %24 : vector<8x32xf32>
    %26 = arith.truncf %25 : vector<8x32xf32> to vector<8x32xbf16>
    %27 = vector.shape_cast %26 : vector<8x32xbf16> to vector<1x8x32xbf16>
    %28 = vector.shape_cast %27 : vector<1x8x32xbf16> to vector<1x8x32xbf16>
    %29 = vector.broadcast %28 : vector<1x8x32xbf16> to vector<4x8x32xbf16>
    %c0_12 = arith.constant 0 : index
    %c0_13 = arith.constant 0 : index
    %c0_14 = arith.constant 0 : index
    %30 = vector.load %arg3[%c0_12, %c0_13, %c0_14] : memref<4x32x24xbf16, #tpu.memory_space<vmem>>, vector<4x32x24xbf16>
    "tpu.trace_start"() <{level = 10 : i32, message = "hsd,hdf->hsf"}> : () -> ()
    %cst_15 = arith.constant dense<0.000000e+00> : vector<4x8x24xf32>
    %31 = tpu.matmul %29, %30, %cst_15 {dimension_numbers = #tpu.dot_dimension_numbers<[2], [1], [1], [2], [0, 0, 0, 1, 1, 2], [0], [0]>} : vector<4x8x32xbf16>, vector<4x32x24xbf16>, vector<4x8x24xf32> -> vector<4x8x24xf32>
    "tpu.trace_stop"() : () -> ()
    %c0_16 = arith.constant 0 : index
    %c0_17 = arith.constant 0 : index
    %c0_18 = arith.constant 0 : index
    %32 = vector.load %arg4[%c0_16, %c0_17, %c0_18] : memref<4x1x24xf32, #tpu.memory_space<vmem>>, vector<4x1x24xf32>
    %33 = vector.broadcast %32 : vector<4x1x24xf32> to vector<4x8x24xf32>
    %34 = arith.addf %31, %33 : vector<4x8x24xf32>
    %35 = vector.extract_strided_slice %34 {offsets = [0, 0, 0], sizes = [4, 8, 8], strides = [1, 1, 1]} : vector<4x8x24xf32> to vector<4x8x8xf32>
    %36 = arith.truncf %35 : vector<4x8x8xf32> to vector<4x8x8xbf16>
    %37 = vector.extract_strided_slice %34 {offsets = [0, 0, 8], sizes = [4, 8, 8], strides = [1, 1, 1]} : vector<4x8x24xf32> to vector<4x8x8xf32>
    %38 = arith.truncf %37 : vector<4x8x8xf32> to vector<4x8x8xbf16>
    %39 = vector.extract_strided_slice %34 {offsets = [0, 0, 16], sizes = [4, 8, 8], strides = [1, 1, 1]} : vector<4x8x24xf32> to vector<4x8x8xf32>
    %40 = arith.truncf %39 : vector<4x8x8xf32> to vector<4x8x8xbf16>
    "tpu.trace_start"() <{level = 10 : i32, message = "hqd,hkd->hqk"}> : () -> ()
    %cst_19 = arith.constant dense<0.000000e+00> : vector<4x8x8xf32>
    %41 = tpu.matmul %36, %38, %cst_19 {dimension_numbers = #tpu.dot_dimension_numbers<[2], [2], [1], [1], [0, 0, 0, 1, 1, 1], [0], [0]>} : vector<4x8x8xbf16>, vector<4x8x8xbf16>, vector<4x8x8xf32> -> vector<4x8x8xf32>
    "tpu.trace_stop"() : () -> ()
    %cst_20 = arith.constant 0.353553385 : f32
    %42 = vector.broadcast %cst_20 : f32 to vector<4x8x8xf32>
    %43 = arith.mulf %41, %42 : vector<4x8x8xf32>
    %cst_21 = arith.constant dense<0xFF800000> : vector<4x8xf32>
    %44 = vector.multi_reduction <maximumf>, %43, %cst_21 [2] : vector<4x8x8xf32> to vector<4x8xf32>
    %45 = vector.shape_cast %44 : vector<4x8xf32> to vector<4x8x1xf32>
    %46 = vector.broadcast %45 : vector<4x8x1xf32> to vector<4x8x8xf32>
    %47 = arith.subf %43, %46 : vector<4x8x8xf32>
    %48 = math.exp %47 : vector<4x8x8xf32>
    %cst_22 = arith.constant dense<0.000000e+00> : vector<4x8xf32>
    %49 = vector.multi_reduction <add>, %48, %cst_22 [2] : vector<4x8x8xf32> to vector<4x8xf32>
    %50 = vector.shape_cast %49 : vector<4x8xf32> to vector<4x8x1xf32>
    %51 = tpu.reciprocal %50 {approx = true} : vector<4x8x1xf32> -> vector<4x8x1xf32>
    %52 = vector.broadcast %51 : vector<4x8x1xf32> to vector<4x8x8xf32>
    %53 = arith.mulf %48, %52 : vector<4x8x8xf32>
    %54 = arith.truncf %53 : vector<4x8x8xf32> to vector<4x8x8xbf16>
    "tpu.trace_start"() <{level = 10 : i32, message = "hqk,hkd->hqd"}> : () -> ()
    %cst_23 = arith.constant dense<0.000000e+00> : vector<4x8x8xf32>
    %55 = tpu.matmul %54, %40, %cst_23 {dimension_numbers = #tpu.dot_dimension_numbers<[2], [1], [1], [2], [0, 0, 0, 1, 1, 2], [0], [0]>} : vector<4x8x8xbf16>, vector<4x8x8xbf16>, vector<4x8x8xf32> -> vector<4x8x8xf32>
    "tpu.trace_stop"() : () -> ()
    %56 = arith.truncf %55 : vector<4x8x8xf32> to vector<4x8x8xbf16>
    %c0_24 = arith.constant 0 : index
    %c0_25 = arith.constant 0 : index
    %c0_26 = arith.constant 0 : index
    %57 = vector.load %arg5[%c0_24, %c0_25, %c0_26] : memref<4x8x32xbf16, #tpu.memory_space<vmem>>, vector<4x8x32xbf16>
    "tpu.trace_start"() <{level = 10 : i32, message = "hsd,hdo->hso"}> : () -> ()
    %cst_27 = arith.constant dense<0.000000e+00> : vector<4x8x32xf32>
    %58 = tpu.matmul %56, %57, %cst_27 {dimension_numbers = #tpu.dot_dimension_numbers<[2], [1], [1], [2], [0, 0, 0, 1, 1, 2], [0], [0]>} : vector<4x8x8xbf16>, vector<4x8x32xbf16>, vector<4x8x32xf32> -> vector<4x8x32xf32>
    "tpu.trace_stop"() : () -> ()
    %cst_28 = arith.constant dense<0.000000e+00> : vector<8x32xf32>
    %59 = vector.multi_reduction <add>, %58, %cst_28 [0] : vector<4x8x32xf32> to vector<8x32xf32>
    %60 = arith.addf %3, %59 : vector<8x32xf32>
    %c0_29 = arith.constant 0 : index
    %c0_30 = arith.constant 0 : index
    %61 = vector.load %arg6[%c0_29, %c0_30] : memref<1x32xf32, #tpu.memory_space<vmem>>, vector<1x32xf32>
    %62 = vector.broadcast %61 : vector<1x32xf32> to vector<8x32xf32>
    %63 = arith.addf %60, %62 : vector<8x32xf32>
    %cst_31 = arith.constant dense<0.000000e+00> : vector<8xf32>
    %64 = vector.multi_reduction <add>, %63, %cst_31 [1] : vector<8x32xf32> to vector<8xf32>
    %65 = vector.shape_cast %64 : vector<8xf32> to vector<8x1xf32>
    %cst_32 = arith.constant 3.200000e+01 : f32
    %66 = vector.broadcast %cst_32 : f32 to vector<8x1xf32>
    %67 = arith.divf %65, %66 : vector<8x1xf32>
    %68 = vector.broadcast %67 : vector<8x1xf32> to vector<8x32xf32>
    %69 = arith.subf %63, %68 : vector<8x32xf32>
    %70 = arith.mulf %69, %69 : vector<8x32xf32>
    %cst_33 = arith.constant dense<0.000000e+00> : vector<8xf32>
    %71 = vector.multi_reduction <add>, %70, %cst_33 [1] : vector<8x32xf32> to vector<8xf32>
    %72 = vector.shape_cast %71 : vector<8xf32> to vector<8x1xf32>
    %cst_34 = arith.constant 0.0322580636 : f32
    %73 = vector.broadcast %cst_34 : f32 to vector<8x1xf32>
    %74 = arith.mulf %72, %73 : vector<8x1xf32>
    %75 = math.sqrt %74 : vector<8x1xf32>
    %c0_35 = arith.constant 0 : index
    %c0_36 = arith.constant 0 : index
    %76 = vector.load %arg13[%c0_35, %c0_36] : memref<1x32xf32, #tpu.memory_space<vmem>>, vector<1x32xf32>
    %77 = vector.broadcast %76 : vector<1x32xf32> to vector<8x32xf32>
    %78 = arith.mulf %77, %69 : vector<8x32xf32>
    %cst_37 = arith.constant 9.99999997E-7 : f32
    %79 = vector.broadcast %cst_37 : f32 to vector<8x1xf32>
    %80 = arith.addf %75, %79 : vector<8x1xf32>
    %81 = vector.broadcast %80 : vector<8x1xf32> to vector<8x32xf32>
    %82 = arith.divf %78, %81 : vector<8x32xf32>
    %c0_38 = arith.constant 0 : index
    %c0_39 = arith.constant 0 : index
    %83 = vector.load %arg14[%c0_38, %c0_39] : memref<1x32xf32, #tpu.memory_space<vmem>>, vector<1x32xf32>
    %84 = vector.broadcast %83 : vector<1x32xf32> to vector<8x32xf32>
    %85 = arith.addf %82, %84 : vector<8x32xf32>
    %86 = arith.truncf %85 : vector<8x32xf32> to vector<8x32xbf16>
    %cst_40 = arith.constant 0.000000e+00 : f32
    %87 = vector.broadcast %cst_40 : f32 to vector<8x32xf32>
    %c0_41 = arith.constant 0 : index
    %c0_42 = arith.constant 0 : index
    %88 = vector.load %arg9[%c0_41, %c0_42] : memref<32x128xbf16, #tpu.memory_space<vmem>>, vector<32x128xbf16>
    %cst_43 = arith.constant dense<0.000000e+00> : vector<8x128xf32>
    %89 = tpu.matmul %86, %88, %cst_43 {dimension_numbers = #tpu.dot_dimension_numbers<[1], [0], [0], [1], [0, 0, 1, 1], [], []>} : vector<8x32xbf16>, vector<32x128xbf16>, vector<8x128xf32> -> vector<8x128xf32>
    %c0_44 = arith.constant 0 : index
    %c0_45 = arith.constant 0 : index
    %90 = vector.load %arg10[%c0_44, %c0_45] : memref<1x128xf32, #tpu.memory_space<vmem>>, vector<1x128xf32>
    %91 = vector.broadcast %90 : vector<1x128xf32> to vector<8x128xf32>
    %92 = arith.addf %89, %91 : vector<8x128xf32>
    %cst_46 = arith.constant 5.000000e-01 : f32
    %93 = vector.broadcast %cst_46 : f32 to vector<8x128xf32>
    %94 = arith.mulf %93, %92 : vector<8x128xf32>
    %cst_47 = arith.constant 4.471500e-02 : f32
    %95 = vector.broadcast %cst_47 : f32 to vector<8x128xf32>
    %96 = arith.mulf %95, %92 : vector<8x128xf32>
    %97 = arith.mulf %96, %92 : vector<8x128xf32>
    %98 = arith.mulf %97, %92 : vector<8x128xf32>
    %99 = arith.addf %92, %98 : vector<8x128xf32>
    %cst_48 = arith.constant 0.797884583 : f32
    %100 = vector.broadcast %cst_48 : f32 to vector<8x128xf32>
    %101 = arith.mulf %100, %99 : vector<8x128xf32>
    %102 = math.tanh %101 : vector<8x128xf32>
    %cst_49 = arith.constant 1.000000e+00 : f32
    %103 = vector.broadcast %cst_49 : f32 to vector<8x128xf32>
    %104 = arith.addf %103, %102 : vector<8x128xf32>
    %105 = arith.mulf %94, %104 : vector<8x128xf32>
    %106 = arith.truncf %105 : vector<8x128xf32> to vector<8x128xbf16>
    %c0_50 = arith.constant 0 : index
    %c0_51 = arith.constant 0 : index
    %107 = vector.load %arg11[%c0_50, %c0_51] : memref<128x32xbf16, #tpu.memory_space<vmem>>, vector<128x32xbf16>
    %cst_52 = arith.constant dense<0.000000e+00> : vector<8x32xf32>
    %108 = tpu.matmul %106, %107, %cst_52 {dimension_numbers = #tpu.dot_dimension_numbers<[1], [0], [0], [1], [0, 0, 1, 1], [], []>} : vector<8x128xbf16>, vector<128x32xbf16>, vector<8x32xf32> -> vector<8x32xf32>
    %109 = arith.addf %87, %108 : vector<8x32xf32>
    %110 = arith.addf %63, %109 : vector<8x32xf32>
    %c0_53 = arith.constant 0 : index
    %c0_54 = arith.constant 0 : index
    %111 = vector.load %arg12[%c0_53, %c0_54] : memref<1x32xf32, #tpu.memory_space<vmem>>, vector<1x32xf32>
    %112 = vector.broadcast %111 : vector<1x32xf32> to vector<8x32xf32>
    %113 = arith.addf %110, %112 : vector<8x32xf32>
    %c0_55 = arith.constant 0 : index
    %c0_56 = arith.constant 0 : index
    %c0_57 = arith.constant 0 : index
    %114 = vector.load %arg15[%c0_55, %c0_56, %c0_57] : memref<1x8x32xf32, #tpu.memory_space<vmem>>, vector<1x8x32xf32>
    %115 = vector.shape_cast %114 : vector<1x8x32xf32> to vector<8x32xf32>
    %116 = vector.shape_cast %113 : vector<8x32xf32> to vector<1x8x32xf32>
    tpu.vector_store %arg15[%c0_55, %c0_56, %c0_57], %116 {strides = array<i32>} : memref<1x8x32xf32, #tpu.memory_space<vmem>>, vector<1x8x32xf32>,
    return
  }
  func.func @transform_0(%arg0: i32) -> (i32, i32, i32) {
    %c0_i32 = arith.constant 0 : i32
    %c0_i32_0 = arith.constant 0 : i32
    %c0_i32_1 = arith.constant 0 : i32
    return %arg0, %c0_i32, %c0_i32_0 : i32, i32, i32
  }
  func.func @transform_1(%arg0: i32) -> (i32, i32) {
    %c0_i32 = arith.constant 0 : i32
    %c0_i32_0 = arith.constant 0 : i32
    %c0_i32_1 = arith.constant 0 : i32
    return %c0_i32, %c0_i32_0 : i32, i32
  }
  func.func @transform_2(%arg0: i32) -> (i32, i32, i32) {
    %c0_i32 = arith.constant 0 : i32
    %c0_i32_0 = arith.constant 0 : i32
    %c0_i32_1 = arith.constant 0 : i32
    %c0_i32_2 = arith.constant 0 : i32
    return %c0_i32, %c0_i32_0, %c0_i32_1 : i32, i32, i32
  }
  func.func @transform_3(%arg0: i32) -> (i32, i32, i32) {
    %c0_i32 = arith.constant 0 : i32
    %c0_i32_0 = arith.constant 0 : i32
    %c0_i32_1 = arith.constant 0 : i32
    %c0_i32_2 = arith.constant 0 : i32
    return %c0_i32, %c0_i32_0, %c0_i32_1 : i32, i32, i32
  }
  func.func @transform_4(%arg0: i32) -> (i32, i32, i32) {
    %c0_i32 = arith.constant 0 : i32
    %c0_i32_0 = arith.constant 0 : i32
    %c0_i32_1 = arith.constant 0 : i32
    %c0_i32_2 = arith.constant 0 : i32
    return %c0_i32, %c0_i32_0, %c0_i32_1 : i32, i32, i32
  }
  func.func @transform_5(%arg0: i32) -> (i32, i32) {
    %c0_i32 = arith.constant 0 : i32
    %c0_i32_0 = arith.constant 0 : i32
    %c0_i32_1 = arith.constant 0 : i32
    return %c0_i32, %c0_i32_0 : i32, i32
  }
  func.func @transform_6(%arg0: i32) -> (i32, i32) {
    %c0_i32 = arith.constant 0 : i32
    %c0_i32_0 = arith.constant 0 : i32
    %c0_i32_1 = arith.constant 0 : i32
    return %c0_i32, %c0_i32_0 : i32, i32
  }
  func.func @transform_7(%arg0: i32) -> (i32, i32) {
    %c0_i32 = arith.constant 0 : i32
    %c0_i32_0 = arith.constant 0 : i32
    %c0_i32_1 = arith.constant 0 : i32
    return %c0_i32, %c0_i32_0 : i32, i32
  }
  func.func @transform_8(%arg0: i32) -> (i32, i32) {
    %c0_i32 = arith.constant 0 : i32
    %c0_i32_0 = arith.constant 0 : i32
    %c0_i32_1 = arith.constant 0 : i32
    return %c0_i32, %c0_i32_0 : i32, i32
  }
  func.func @transform_9(%arg0: i32) -> (i32, i32) {
    %c0_i32 = arith.constant 0 : i32
    %c0_i32_0 = arith.constant 0 : i32
    %c0_i32_1 = arith.constant 0 : i32
    return %c0_i32, %c0_i32_0 : i32, i32
  }
  func.func @transform_10(%arg0: i32) -> (i32, i32) {
    %c0_i32 = arith.constant 0 : i32
    %c0_i32_0 = arith.constant 0 : i32
    %c0_i32_1 = arith.constant 0 : i32
    return %c0_i32, %c0_i32_0 : i32, i32
  }
  func.func @transform_11(%arg0: i32) -> (i32, i32) {
    %c0_i32 = arith.constant 0 : i32
    %c0_i32_0 = arith.constant 0 : i32
    %c0_i32_1 = arith.constant 0 : i32
    return %c0_i32, %c0_i32_0 : i32, i32
  }
  func.func @transform_12(%arg0: i32) -> (i32, i32) {
    %c0_i32 = arith.constant 0 : i32
    %c0_i32_0 = arith.constant 0 : i32
    %c0_i32_1 = arith.constant 0 : i32
    return %c0_i32, %c0_i32_0 : i32, i32
  }
  func.func @transform_13(%arg0: i32) -> (i32, i32) {
    %c0_i32 = arith.constant 0 : i32
    %c0_i32_0 = arith.constant 0 : i32
    %c0_i32_1 = arith.constant 0 : i32
    return %c0_i32, %c0_i32_0 : i32, i32
  }
  func.func @transform_14(%arg0: i32) -> (i32, i32, i32) {
    %c0_i32 = arith.constant 0 : i32
    %c0_i32_0 = arith.constant 0 : i32
    %c0_i32_1 = arith.constant 0 : i32
    return %arg0, %c0_i32, %c0_i32_0 : i32, i32, i32
  }
}

</mosaic_0001>

<bundles_post_ra>
// kernel: tpu_custom_call.1
= control target key start
LH: loop header
LB: loop body
LE: loop exit
PB: predicated region body
PF: predicated region fallthrough
CT: control target
= control target key end

     0   :  { %s2527_s0 = inlined_call_operand.vmem [shape: f32[2,8,32], index: 0, kind: input, shape index: {}]   ;;  %s2528_s1 = inlined_call_operand.vmem [shape: f32[8,32], index: 1, kind: input, shape index: {}]   ;;  %s2529_s2 = inlined_call_operand.vmem [shape: bf16[4,32,24], index: 2, kind: input, shape index: {}]   ;;  %s2530_s3 = inlined_call_operand.vmem [shape: f32[4,1,24], index: 3, kind: input, shape index: {}]   ;;  %s2531_s4 = inlined_call_operand.vmem [shape: bf16[4,8,32], index: 4, kind: input, shape index: {}]   ;;  %s2532_s5 = inlined_call_operand.vmem [shape: f32[1,32], index: 5, kind: input, shape index: {}]   ;;  %s2533_s6 = inlined_call_operand.vmem [shape: f32[1,32], index: 6, kind: input, shape index: {}]   ;;  %s2534_s7 = inlined_call_operand.vmem [shape: f32[1,32], index: 7, kind: input, shape index: {}]   ;;  %s2535_s8 = inlined_call_operand.vmem [shape: bf16[32,128], index: 8, kind: input, shape index: {}]   ;;  %s2536_s9 = inlined_call_operand.vmem [shape: f32[1,128], index: 9, kind: input, shape index: {}]   ;;  %s2537_s10 = inlined_call_operand.vmem [shape: bf16[128,32], index: 10, kind: input, shape index: {}]   ;;  %s2538_s11 = inlined_call_operand.vmem [shape: f32[1,32], index: 11, kind: input, shape index: {}]   ;;  %s2539_s12 = inlined_call_operand.vmem [shape: f32[1,32], index: 12, kind: input, shape index: {}]   ;;  %s2540_s13 = inlined_call_operand.vmem [shape: f32[1,32], index: 13, kind: input, shape index: {}]   ;;  %s2541_s14 = inlined_call_operand.hbm [shape: f32[2,8,32], index: 14, kind: output, shape index: {}]  }
   0x1   :  { %2542 = sst [smem:[#allocation5_spill]] %s2527_s0 }
   0x2   :  { %2543 = sst [smem:[#allocation6_spill]] %s2528_s1 }
   0x3   :  { %2544 = sst [smem:[#allocation7_spill]] %s2529_s2 }
   0x4   :  { %2545 = sst [smem:[#allocation8_spill]] %s2530_s3 }
   0x5   :  { %19 = vsyncpa [#allocation3], 0 }
   0x6   :  { %21 = vsyncpa [#allocation3 + $0x1], 0  ;;  %s2180_s29 = smov 0   ;;  %s2182_s30 = smov 0  }
   0x7   :  { %s2184_s15 = smov 0   ;;  %s2186_s16 = smov 0  }
   0x8 LB: > { %s2201_s17 = sadd.s32 4294967295, %s2098_s16   ;;  %s1715_s18 = sadd.s32 4294967294, %s2098_s16   ;;  %s2098_s16 = sphi %s2186_s16, %s2555_s16   ;;  %s2094_s15 = sphi %s2184_s15, %s2554_s15   ;;  %s2090_s30 = sphi %s2182_s30, %s2553_s30   ;;  %s2086_s29 = sphi %s2180_s29, %s2552_s29  }
   0x9   : > { %s2205_s19 = sadd.s32 1, %s2098_s16   ;;  %s333_s20 = sadd.s32 1, %s2094_s15 }
   0xa   : > { %s330_s21 = ssub.s32 %s2098_s16, %s2205_s19  ;;  %p343_p0 = scmp.ne.s32.totalorder %s2094_s15, %s2090_s30 }
   0xb   : > { %p331_p1 = scmp.eq.s32.totalorder %s330_s21, 0  ;;  %p344_p2 = scmp.eq.s32.totalorder %s2201_s17, 1 }
   0xc   : > { %p349_p3 = scmp.ne.s32.totalorder %s2090_s30, %s2086_s29  ;;  %p350_p4 = scmp.eq.s32.totalorder %s1715_s18, 1 }
   0xd   : > { %s2216_s22 = scalar_select %p331_p1, %s2094_s15, %s333_s20  }
   0xe   : > { %p2218_p5 = por %p344_p2, %p343_p0  ;;  %p2222_p6 = por %p350_p4, %p349_p3 }
   0xf   : > { %p1718_p7 = scmp.ge.s32.totalorder %s2098_s16, 1  ;;  %p414_p8 = scmp.lt.s32.totalorder %s2098_s16, 3 }
  0x11   : > { %p415_p9 = pnand %p1718_p7, %p414_p8 }
  0x12   : > { %p459_p10 = scmp.lt.s32.totalorder (!%p415_p9), %s2201_s17, 1  ;;  %s2548_s1 = sld [smem:[#allocation6_spill]] (!%p415_p9) }
  0x13   : > { %418 = sbr.rel (%p415_p9) target bundleno = 2363 (0x93b), region = 76  ;;  %s2549_s0 = sld [smem:[#allocation5_spill]] (!%p415_p9) }
  0x14   : > { %s2550_s2 = sld [smem:[#allocation7_spill]] (!%p415_p9)  ;;  %s2102_s20 = smov (!%p415_p9), 120  }
  0x15   : > { %s2551_s3 = sld [smem:[#allocation8_spill]] (!%p415_p9)  ;;  %s2103_s18 = smov (!%p415_p9), 112  }
  0x16   : > { %s456_s27 = sand.u32 (!%p415_p9), 1, %s2090_s30   ;;  %s2104_s28 = smov (!%p415_p9), [#allocation2]  }
  0x18   : > { %s460_s25 = scalar_select %p459_p10, %s2201_s17, 1  ;;  %v465_v0 = vld [vmem:[%s2548_s1] sm:$0xff]  ;;  %vm467_vm0 = vcmask 261120   ;;  %v2100_v11 = vmov 0.0   ;;  %vm2101_vm1 = vmmov 0   ;;  %vm768_vm4 = vcmask 64512  }
  0x19   : > { %1819 = vmatprep.subr.bf16.mxu0 %v2100_v11  ;;  %1843 = vmatprep.subr.bf16.mxu1 %v2100_v11  ;;  %v1721_v22 = vld [vmem:[%s2533_s6] ss:$0 sm:$0xff]  ;;  %vm1019_vm5 = vcmask 1043456  }
  0x1a   : > { %s1720_s26 = sshll.u32 %s460_s25, 3  ;;  %v1994_v9 = vld [vmem:[%s2550_s2 + $0x8] sm:$0xff]   ;;  %v1995_v10 = vld [vmem:[%s2550_s2 + $0x38] sm:$0xff]   ;;  %v1996_v12 = vld [vmem:[%s2550_s2] sm:$0xff]   ;;  %1823 = vmatprep.mubr.msk.bf16.mxu0 %vm2101_vm1, %v2100_v11  ;;  %1847 = vmatprep.mubr.msk.bf16.mxu1 %vm2101_vm1, %v2100_v11 }
  0x1b   : > { %s462_s21 = scalar_lea.vmem %s2549_s0, %s1720_s26  ;;  %1820 = vmatpush3.bf16.msra.mxu0 %v1994_v9  ;;  %1844 = vmatpush3.bf16.msra.mxu1 %v1995_v10  ;;  %v1997_v13 = vld [vmem:[%s2550_s2 + $0x30] sm:$0xff]   ;;  %v1722_v25 = vld [vmem:[%s2534_s7] ss:$0 sm:$0xff]  ;;  %v1998_v28 = vld [vmem:[%s2550_s2 + $0x18] sm:$0xff]   ;;  %s1719_s26 = sshll.u32 %s456_s27, 3 }
  0x1c   : > { %v464_v1 = vld [vmem:[%s462_s21] sm:$0xff]  ;;  %1821 = vmatprep.subr.bf16.mxu0 %v2100_v11  ;;  %1845 = vmatprep.subr.bf16.mxu1 %v2100_v11  ;;  %v1999_v30 = vld [vmem:[%s2550_s2 + $0x10] sm:$0xff]   ;;  %v2000_v31 = vld [vmem:[%s2550_s2 + $0x28] sm:$0xff]   ;;  %s458_s21 = scalar_lea.vmem [#allocation2], %s1719_s26 }
  0x1d   : > { %v2236_v2 = vadd.f32 %v465_v0, %v464_v1  ;;  %v2001_v32 = vld [vmem:[%s2550_s2 + $0x20] sm:$0xff]   ;;  %s1656_s0 = sshll.u32 %s458_s21, 4  ;;  %s2487_s0 = int_to_ptr.vmem [resolvable:$true] %s1656_s0 }
  0x1e   : > { %v1723_v33 = vld [vmem:[%s2551_s3] ss:$0 sm:$0xff]  ;;  %v1724_v44 = vld [vmem:[%s2551_s3 + $0x1] ss:$0 sm:$0xff]  ;;  %v1726_v45 = vld [vmem:[%s2551_s3 + $0x3] ss:$0 sm:$0xff] }
  0x1f   : > { %v468_v3 = vsel %vm467_vm0, %v2236_v2, 0.0  ;;  %1822 = vmatpush3.bf16.msra.mxu0 %v1996_v12  ;;  %1846 = vmatpush3.bf16.msra.mxu1 %v1997_v13  ;;  %v1725_v53 = vld [vmem:[%s2551_s3 + $0x2] ss:$0 sm:$0xff]  ;;  %s2038_s26 = scalar_lea.vmem %s2487_s0, 128 }
  0x20   : > { %469 = vadd.xlane.f32.xlu0 %v468_v3  ;;  %1827 = vmatprep.subr.bf16.mxu0 %v2100_v11  ;;  %p2039_p11 = scmp.ne.s32.totalorder %s2487_s0, %s2038_s26 }
  0x21   : > { %1857 = vmatprep.subr.bf16.mxu1 %v2100_v11 }
  0x22   : > { %p2040_p12 = pnand %p2039_p11, %p2218_p5 }
  0x24   : > { %p2041_p13 = pneg %p2040_p12 }
  0xa9   : > { %v470_v4 = vpop.xlane.xlu0 %469 }
  0xaa   : > { %v472_v5 = vmul.f32 0.03125, %v470_v4 }
  0xac   : > { %v473_v6 = vsub.f32 %v2236_v2, %v472_v5 }
  0xae   : > { %v474_v7 = vmul.f32 %v473_v6, %v473_v6  ;;  %v493_v23 = vmul.f32 %v1721_v22, %v473_v6 }
  0xb0   : > { %v475_v8 = vsel %vm467_vm0, %v474_v7, 0.0 }
  0xb1   : > { %476 = vadd.xlane.f32.xlu0 %v475_v8 }
 0x13a   : > { %v477_v14 = vpop.xlane.xlu0 %476 }
 0x13b   : > { %v478_v15 = vmul.f32 0.032258064, %v477_v14 }
 0x13d   : > { %2012 = vrsqrt.f32 %v478_v15  ;;  %vm481_vm2 = vcmp.eq.f32.partialorder %v478_v15, inf  ;;  %v484_v18 = vand.u32 2147483648, %v478_v15  ;;  %vm483_vm3 = vcmp.eq.f32.partialorder %v478_v15, 0.0 }
 0x14a   : > { %v2013_v16 = vpop.eup %2012 }
 0x14b   : > { %v480_v17 = vmul.f32 %v2013_v16, %v478_v15 }
 0x14d   : > { %v482_v19 = vsel %vm481_vm2, %v478_v15, %v480_v17 }
 0x14e   : > { %v485_v20 = vsel %vm483_vm3, %v484_v18, %v482_v19 }
 0x14f   : > { %v494_v21 = vadd.f32 1e-06, %v485_v20 }
 0x151   : > { %2014 = vrcp.f32 %v494_v21 }
 0x15e   : > { %v2015_v24 = vpop.eup %2014 }
 0x15f   : > { %v496_v26 = vmul.f32 %v2015_v24, %v493_v23 }
 0x161   : > { %v504_v27 = vadd.f32 %v1722_v25, %v496_v26 }
 0x163   : > { %v505_v29 = vpack.c.bf16 %v504_v27, %v504_v27 }
 0x165   : > { %1824 = vmatmul.mubr.msk.bf16.vlgmr.msra.gmra.mxu0 %vm467_vm0, %v505_v29  ;;  %1848 = vmatmul.mubr.msk.bf16.vlgmr.msra.gmra.mxu1 %vm467_vm0, %v505_v29 }
 0x166   : > { %1828 = vmatpush3.bf16.msra.mxu0 %v1998_v28  ;;  %1831 = vmatprep.mubr.msk.bf16.mxu0 %vm2101_vm1, %v2100_v11 }
 0x167   : > { %1829 = vmatprep.subr.bf16.mxu0 %v2100_v11  ;;  %1859 = vmatprep.mubr.msk.bf16.mxu1 %vm2101_vm1, %v2100_v11 }
 0x16a   : > { %1830 = vmatpush3.bf16.msra.mxu0 %v1999_v30 }
 0x16b   : > { %1835 = vmatprep.subr.bf16.mxu0 %v2100_v11 }
 0x16d   : > { %1832 = vmatmul.mubr.msk.bf16.vlgmr.msra.gmra.mxu0 %vm467_vm0, %v505_v29 }
 0x16e   : > { %1836 = vmatpush3.bf16.msra.mxu0 %v2000_v31  ;;  %1839 = vmatprep.mubr.msk.bf16.mxu0 %vm2101_vm1, %v2100_v11 }
 0x16f   : > { %1837 = vmatprep.subr.bf16.mxu0 %v2100_v11 }
 0x172   : > { %1838 = vmatpush3.bf16.msra.mxu0 %v2001_v32 }
 0x173   : > { %1851 = vmatprep.subr.bf16.mxu0 %v2100_v11 }
 0x175   : > { %1840 = vmatmul.mubr.msk.bf16.vlgmr.msra.gmra.mxu0 %vm467_vm0, %v505_v29 }
 0x176   : > { %1853 = vmatprep.mubr.msk.bf16.mxu0 %vm2101_vm1, %v2100_v11 }
 0x225   : > { %v599_v34 = vpop.f32.mrf.mxu0  ;;  %v755_v35 = vpop.f32.mrf.mxu1 }
 0x226   : > { %v600_v36 = vadd.f32 %v1723_v33, %v599_v34  ;;  %v756_v49 = vadd.f32 %v1726_v45, %v755_v35 }
 0x227   : > { %v1825_v37 = vpop.f32.mrf.mxu0  ;;  %v1849_v38 = vpop.f32.mrf.mxu1 }
 0x228   : > { %v2301_v39 = vpack.c.bf16 %v600_v36, %v600_v36  ;;  %v2316_v54 = vpack.c.bf16 %v756_v49, %v756_v49 }
 0x229   : > { %v602_v40 = vpop.f32.mrf.mxu0  ;;  %v758_v41 = vpop.f32.mrf.mxu1 }
 0x22a   : > { %766 = vrot.lane.b32.xlu1 %v2301_v39, %s2102_s20 }
 0x22b   : > { %v1826_v42 = vpop.f32.mrf.mxu0  ;;  %v1850_v43 = vpop.f32.mrf.mxu1 }
 0x22d   : > { %v651_v46 = vpop.f32.mrf.mxu0 }
 0x22e   : > { %v652_v47 = vadd.f32 %v1724_v44, %v651_v46 }
 0x22f   : > { %v1833_v48 = vpop.f32.mrf.mxu0 }
 0x230   : > { %v2310_v50 = vpack.c.bf16 %v652_v47, %v652_v47 }
 0x231   : > { %v654_v51 = vpop.f32.mrf.mxu0 }
 0x232   : > { %816 = vrot.lane.b32.xlu1 %v2310_v50, %s2102_s20 }
 0x233   : > { %v1834_v52 = vpop.f32.mrf.mxu0 }
 0x235   : > { %v703_v55 = vpop.f32.mrf.mxu0 }
 0x236   : > { %v704_v56 = vadd.f32 %v1725_v53, %v703_v55  ;;  %914 = vrot.lane.b32.xlu1 %v2316_v54, %s2102_s20 }
 0x237   : > { %v1841_v57 = vpop.f32.mrf.mxu0 }
 0x238   : > { %v2319_v58 = vpack.c.bf16 %v704_v56, %v704_v56 }
 0x239   : > { %v706_v59 = vpop.f32.mrf.mxu0 }
 0x23a   : > { %865 = vrot.lane.b32.xlu0 %v2319_v58, %s2102_s20  ;;  %s1768_s20 = sshll.u32 %s2201_s17, 7  ;;  %s1643_s17 = scalar_lea.sflag [#allocation3], %s456_s27 }
 0x23b   : > { %v1842_v60 = vpop.f32.mrf.mxu0  ;;  %s2485_s2 = scalar_lea.hbm %s2541_s14, %s1768_s20 }
 0x29c   : > { %v767_v61 = vpop.permute.xlu1 %766 }
 0x29d   : > { %v773_v62 = vsel %vm768_vm4, %v767_v61, 0 }
 0x29e   : > { %1852 = vmatpush3.bf16.xpose.msra.mxu0 %v773_v62 }
 0x29f   : > { %1863 = vmatprep.subr.bf16.mxu0 %v2100_v11 }
 0x2a4   : > { %v817_v63 = vpop.permute.xlu1 %816 }
 0x2a5   : > { %v822_v0 = vsel %vm768_vm4, %v817_v63, 0  ;;  %1854 = vmatmul.mubr.msk.bf16.vlgmr.msra.gmra.mxu0 %vm768_vm4, %v2301_v39 }
 0x2a6   : > { %1858 = vmatpush3.bf16.xpose.msra.mxu1 %v822_v0  ;;  %1865 = vmatprep.mubr.msk.bf16.mxu0 %vm2101_vm1, %v2100_v11 }
 0x2a7   : > { %1869 = vmatprep.subr.bf16.mxu1 %v2100_v11 }
 0x2a8   : > { %v915_v1 = vpop.permute.xlu1 %914 }
 0x2a9   : > { %v920_v4 = vsel %vm768_vm4, %v915_v1, 0 }
 0x2ac   : > { %v866_v3 = vpop.permute.xlu0 %865 }
 0x2ad   : > { %v871_v5 = vsel %vm768_vm4, %v866_v3, 0  ;;  %1860 = vmatmul.mubr.msk.bf16.vlgmr.msra.gmra.mxu1 %vm768_vm4, %v2310_v50 }
 0x2ae   : > { %1864 = vmatpush3.bf16.xpose.msra.mxu0 %v871_v5  ;;  %1870 = vmatpush3.bf16.xpose.msra.mxu1 %v920_v4 }
 0x2af   : > { %1871 = vmatprep.mubr.msk.bf16.mxu1 %vm2101_vm1, %v2100_v11  ;;  %1875 = vmatprep.subr.bf16.mxu0 %v2100_v11 }
 0x2b0   : > { %1881 = vmatprep.subr.bf16.mxu1 %v2100_v11 }
 0x2b5   : > { %1866 = vmatmul.mubr.msk.bf16.vlgmr.msra.gmra.mxu0 %vm768_vm4, %v2319_v58  ;;  %1872 = vmatmul.mubr.msk.bf16.vlgmr.msra.gmra.mxu1 %vm768_vm4, %v2316_v54 }
 0x2b6   : > { %1877 = vmatprep.mubr.msk.bf16.mxu0 %vm2101_vm1, %v2100_v11  ;;  %1883 = vmatprep.mubr.msk.bf16.mxu1 %vm2101_vm1, %v2100_v11 }
 0x365   : > { %v809_v6 = vpop.f32.mrf.mxu0 }
 0x366   : > { %v962_v7 = vmul.f32 0.35355338, %v809_v6 }
 0x367   : > { %v1855_v8 = vpop.f32.mrf.mxu0 }
 0x368   : > { %v966_v9 = vsel %vm768_vm4, %v962_v7, -inf }
 0x369   : > { %967 = vmax.xlane.f32.xlu1 %v966_v9  ;;  %v812_v10 = vpop.f32.mrf.mxu0 }
 0x36b   : > { %v1856_v12 = vpop.f32.mrf.mxu0 }
 0x36d   : > { %v858_v13 = vpop.f32.mrf.mxu1 }
 0x36e   : > { %v963_v14 = vmul.f32 0.35355338, %v858_v13  ;;  %v1211_v13 = vld [vmem:[%s2531_s4] sm:$0xf] }
 0x36f   : > { %v1861_v15 = vpop.f32.mrf.mxu1 }
 0x370   : > { %v969_v16 = vsel %vm768_vm4, %v963_v14, -inf  ;;  %v1212_v15 = vld [vmem:[%s2531_s4 + $0x4] sm:$0xf] }
 0x371   : > { %v861_v17 = vpop.f32.mrf.mxu1  ;;  %970 = vmax.xlane.f32.xlu0 %v969_v16  ;;  %v1265_v16 = vsel %vm1019_vm5, %v1212_v15, 0 }
 0x372   : > { %v1213_v17 = vld [vmem:[%s2531_s4 + $0x8] sm:$0xf] }
 0x373   : > { %v1862_v18 = vpop.f32.mrf.mxu1 }
 0x375   : > { %v907_v19 = vpop.f32.mrf.mxu0  ;;  %v956_v20 = vpop.f32.mrf.mxu1 }
 0x376   : > { %v964_v21 = vmul.f32 0.35355338, %v907_v19  ;;  %v965_v24 = vmul.f32 0.35355338, %v956_v20  ;;  %v1311_v20 = vsel %vm1019_vm5, %v1213_v17, 0 }
 0x377   : > { %v1867_v22 = vpop.f32.mrf.mxu0  ;;  %v1873_v23 = vpop.f32.mrf.mxu1 }
 0x378   : > { %v972_v25 = vsel %vm768_vm4, %v964_v21, -inf  ;;  %v975_v30 = vsel %vm768_vm4, %v965_v24, -inf }
 0x379   : > { %v959_v26 = vpop.f32.mrf.mxu1  ;;  %973 = vmax.xlane.f32.xlu1 %v972_v25  ;;  %v910_v27 = vpop.f32.mrf.mxu0 }
 0x37b   : > { %v1868_v28 = vpop.f32.mrf.mxu0  ;;  %v1874_v29 = vpop.f32.mrf.mxu1 }
 0x37d   : > { %976 = vmax.xlane.f32.xlu1 %v975_v30 }
 0x387   : > { %1014 = vrot.lane.b32.xlu0 %v2301_v39, %s2103_s18 }
 0x38e   : > { %1063 = vrot.lane.b32.xlu1 %v2310_v50, %s2103_s18 }
 0x3f2   : > { %v968_v31 = vpop.xlane.xlu1 %967 }
 0x3f3   : > { %v978_v32 = vsub.f32 %v962_v7, %v968_v31 }
 0x3f5   : > { %v982_v33 = vmul.f32 1.442695, %v978_v32 }
 0x3f7   : > { %2016 = vpow2.f32 %v982_v33 }
 0x3fa   : > { %v971_v34 = vpop.xlane.xlu0 %970 }
 0x3fb   : > { %v979_v35 = vsub.f32 %v963_v14, %v971_v34  ;;  %v1219_v14 = vsel %vm1019_vm5, %v1211_v13, 0 }
 0x3fd   : > { %v984_v36 = vmul.f32 1.442695, %v979_v35 }
 0x3fe   : > { %v1015_v37 = vpop.permute.xlu0 %1014 }
 0x3ff   : > { %2018 = vpow2.f32 %v984_v36  ;;  %v1021_v38 = vsel %vm1019_vm5, %v1015_v37, 0 }
 0x400   : > { %1876 = vmatpush3.bf16.msra.mxu0 %v1021_v38 }
 0x401   : > { %1887 = vmatprep.subr.bf16.mxu0 %v2100_v11 }
 0x402   : > { %v974_v40 = vpop.xlane.xlu1 %973 }
 0x403   : > { %v980_v39 = vsub.f32 %v964_v21, %v974_v40 }
 0x404   : > { %v2017_v41 = vpop.eup %2016 }
 0x405   : > { %v986_v42 = vmul.f32 1.442695, %v980_v39  ;;  %v990_v43 = vsel %vm768_vm4, %v2017_v41, 0.0 }
 0x406   : > { %991 = vadd.xlane.f32.xlu1 %v990_v43  ;;  %v977_v44 = vpop.xlane.xlu1 %976 }
 0x407   : > { %2020 = vpow2.f32 %v986_v42  ;;  %v981_v45 = vsub.f32 %v965_v24, %v977_v44  ;;  %v1214_v24 = vld [vmem:[%s2531_s4 + $0xc] sm:$0xf] }
 0x408   : > { %v1357_v27 = vsel %vm1019_vm5, %v1214_v24, 0 }
 0x409   : > { %v988_v46 = vmul.f32 1.442695, %v981_v45 }
 0x40a   : > { %v1064_v47 = vpop.permute.xlu1 %1063 }
 0x40b   : > { %2022 = vpow2.f32 %v988_v46  ;;  %v1069_v48 = vsel %vm1019_vm5, %v1064_v47, 0 }
 0x40c   : > { %v2019_v49 = vpop.eup %2018  ;;  %1882 = vmatpush3.bf16.msra.mxu1 %v1069_v48 }
 0x40d   : > { %v993_v50 = vsel %vm768_vm4, %v2019_v49, 0.0  ;;  %1893 = vmatprep.subr.bf16.mxu1 %v2100_v11 }
 0x40e   : > { %994 = vadd.xlane.f32.xlu1 %v993_v50 }
 0x414   : > { %v2021_v51 = vpop.eup %2020 }
 0x415   : > { %v996_v52 = vsel %vm768_vm4, %v2021_v51, 0.0 }
 0x416   : > { %997 = vadd.xlane.f32.xlu0 %v996_v52 }
 0x418   : > { %v2023_v53 = vpop.eup %2022 }
 0x419   : > { %v999_v55 = vsel %vm768_vm4, %v2023_v53, 0.0 }
 0x41a   : > { %1000 = vadd.xlane.f32.xlu1 %v999_v55 }
 0x42b   : > { %1111 = vrot.lane.b32.xlu1 %v2319_v58, %s2103_s18 }
 0x42c   : > { %1159 = vrot.lane.b32.xlu0 %v2316_v54, %s2103_s18  ;;  %s2042_s18 = sshll.u32 %s2104_s28, 4  ;;  %s2043_s18 = int_to_ptr.vmem [resolvable:$false] %s2042_s18 }
 0x42d   : > { %s2044_s1 = scalar_lea.vmem %s2043_s18, 256  ;;  %p2045_p0 = scmp.lt.s32.totalorder %s2487_s0, %s2043_s18 }
 0x42e   : > { %p2046_p1 = scmp.lt.s32.totalorder %s2044_s1, %s2038_s26 }
 0x430   : > { %p2047_p2 = por %p2046_p1, %p2045_p0 }
 0x432   : > { %p2048_p3 = pnand %p2047_p2, %p2041_p13 }
 0x48f   : > { %v992_v56 = vpop.xlane.xlu1 %991 }
 0x490   : > { %2024 = vrcp.f32 %v992_v56 }
 0x497   : > { %v995_v57 = vpop.xlane.xlu1 %994 }
 0x498   : > { %2026 = vrcp.f32 %v995_v57 }
 0x49d   : > { %v2025_v59 = vpop.eup %2024 }
 0x49e   : > { %v1006_v60 = vmul.f32 %v2025_v59, %v2017_v41 }
 0x49f   : > { %v998_v61 = vpop.xlane.xlu0 %997 }
 0x4a0   : > { %2028 = vrcp.f32 %v998_v61  ;;  %v1010_v62 = vpack.c.bf16 %v1006_v60, %v1006_v60 }
 0x4a2   : > { %1878 = vmatmul.mubr.msk.bf16.vlgmr.msra.gmra.mxu0 %vm768_vm4, %v1010_v62 }
 0x4a3   : > { %v1001_v63 = vpop.xlane.xlu1 %1000  ;;  %1889 = vmatprep.mubr.msk.bf16.mxu0 %vm2101_vm1, %v2100_v11  ;;  %v1160_v1 = vpop.permute.xlu0 %1159 }
 0x4a4   : > { %2030 = vrcp.f32 %v1001_v63  ;;  %v1165_v5 = vsel %vm1019_vm5, %v1160_v1, 0 }
 0x4a5   : > { %v2027_v58 = vpop.eup %2026 }
 0x4a6   : > { %v1007_v0 = vmul.f32 %v2027_v58, %v2019_v49  ;;  %v1751_v58 = vld [vmem:[%s2532_s5] ss:$0 sm:$0xff] }
 0x4a7   : > { %v1112_v54 = vpop.permute.xlu1 %1111 }
 0x4a8   : > { %v1117_v3 = vsel %vm1019_vm5, %v1112_v54, 0  ;;  %v1011_v4 = vpack.c.bf16 %v1007_v0, %v1007_v0 }
 0x4a9   : > { %1888 = vmatpush3.bf16.msra.mxu0 %v1117_v3 }
 0x4aa   : > { %1884 = vmatmul.mubr.msk.bf16.vlgmr.msra.gmra.mxu1 %vm768_vm4, %v1011_v4  ;;  %1899 = vmatprep.subr.bf16.mxu0 %v2100_v11 }
 0x4ab   : > { %1894 = vmatpush3.bf16.msra.mxu1 %v1165_v5  ;;  %1895 = vmatprep.mubr.msk.bf16.mxu1 %vm2101_vm1, %v2100_v11 }
 0x4ac   : > { %1905 = vmatprep.subr.bf16.mxu1 %v2100_v11 }
 0x4ad   : > { %v2029_v6 = vpop.eup %2028 }
 0x4ae   : > { %v1008_v7 = vmul.f32 %v2029_v6, %v2021_v51 }
 0x4b0   : > { %v1012_v8 = vpack.c.bf16 %v1008_v7, %v1008_v7 }
 0x4b1   : > { %v2031_v9 = vpop.eup %2030 }
 0x4b2   : > { %1890 = vmatmul.mubr.msk.bf16.vlgmr.msra.gmra.mxu0 %vm768_vm4, %v1012_v8  ;;  %v1009_v10 = vmul.f32 %v2031_v9, %v2023_v53 }
 0x4b3   : > { %1901 = vmatprep.mubr.msk.bf16.mxu0 %vm2101_vm1, %v2100_v11  ;;  %1900 = vmatpush3.bf16.msra.mxu0 %v1219_v14 }
 0x4b4   : > { %v1013_v12 = vpack.c.bf16 %v1009_v10, %v1009_v10  ;;  %1911 = vmatprep.subr.bf16.mxu0 %v2100_v11  ;;  %v2003_v10 = vld [vmem:[%s2535_s8] sm:$0xff]  }
 0x4b6   : > { %1896 = vmatmul.mubr.msk.bf16.vlgmr.msra.gmra.mxu1 %vm768_vm4, %v1013_v12 }
 0x4b7   : > { %1907 = vmatprep.mubr.msk.bf16.mxu1 %vm2101_vm1, %v2100_v11  ;;  %1906 = vmatpush3.bf16.msra.mxu1 %v1265_v16 }
 0x4b8   : > { %1917 = vmatprep.subr.bf16.mxu1 %v2100_v11 }
 0x562   : > { %v1057_v18 = vpop.f32.mrf.mxu0 }
 0x563   : > { %v1207_v19 = vpack.c.bf16 %v1057_v18, %v1057_v18 }
 0x564   : > { %v1879_v21 = vpop.f32.mrf.mxu0 }
 0x565   : > { %1902 = vmatmul.mubr.msk.bf16.vlgmr.msra.gmra.mxu0 %vm768_vm4, %v1207_v19 }
 0x566   : > { %v1060_v22 = vpop.f32.mrf.mxu0  ;;  %1912 = vmatpush3.bf16.msra.mxu0 %v1311_v20  ;;  %1913 = vmatprep.mubr.msk.bf16.mxu0 %vm2101_vm1, %v2100_v11  ;;  %v1752_v20 = vld [vmem:[%s2539_s12] ss:$0 sm:$0xff] }
 0x567   : > { %1923 = vmatprep.subr.bf16.mxu0 %v2100_v11 }
 0x568   : > { %v1880_v23 = vpop.f32.mrf.mxu0 }
 0x569   : > { %v1753_v23 = vld [vmem:[%s2540_s13] ss:$0 sm:$0xff] }
 0x56a   : > { %v1105_v25 = vpop.f32.mrf.mxu1 }
 0x56b   : > { %v1208_v26 = vpack.c.bf16 %v1105_v25, %v1105_v25 }
 0x56c   : > { %v1885_v28 = vpop.f32.mrf.mxu1 }
 0x56d   : > { %1908 = vmatmul.mubr.msk.bf16.vlgmr.msra.gmra.mxu1 %vm768_vm4, %v1208_v26  ;;  %v2005_v28 = vld [vmem:[%s2537_s10 + $0x30] sm:$0xff]  }
 0x56e   : > { %v1108_v29 = vpop.f32.mrf.mxu1  ;;  %1918 = vmatpush3.bf16.msra.mxu1 %v1357_v27  ;;  %1919 = vmatprep.mubr.msk.bf16.mxu1 %vm2101_vm1, %v2100_v11  ;;  %v2004_v27 = vld [vmem:[%s2537_s10 + $0x38] sm:$0xff]  }
 0x56f   : > { %1931 = vmatprep.subr.bf16.mxu1 %v2100_v11  ;;  %v2006_v29 = vld [vmem:[%s2537_s10 + $0x28] sm:$0xff]  }
 0x570   : > { %v1886_v30 = vpop.f32.mrf.mxu1 }
 0x571   : > { %v2007_v30 = vld [vmem:[%s2537_s10 + $0x20] sm:$0xff]  }
 0x572   : > { %v1153_v31 = vpop.f32.mrf.mxu0 }
 0x573   : > { %v1209_v32 = vpack.c.bf16 %v1153_v31, %v1153_v31  ;;  %v2008_v31 = vld [vmem:[%s2537_s10 + $0x18] sm:$0xff]  }
 0x574   : > { %v1891_v33 = vpop.f32.mrf.mxu0 }
 0x575   : > { %1914 = vmatmul.mubr.msk.bf16.vlgmr.msra.gmra.mxu0 %vm768_vm4, %v1209_v32  ;;  %v2009_v32 = vld [vmem:[%s2537_s10 + $0x10] sm:$0xff]   ;;  %v2010_v33 = vld [vmem:[%s2537_s10 + $0x8] sm:$0xff]  }
 0x576   : > { %v1156_v34 = vpop.f32.mrf.mxu0  ;;  %v1201_v35 = vpop.f32.mrf.mxu1  ;;  %1927 = vmatprep.mubr.msk.bf16.mxu0 %vm2101_vm1, %v2100_v11 }
 0x577   : > { %v1210_v36 = vpack.c.bf16 %v1201_v35, %v1201_v35  ;;  %v2011_v34 = vld [vmem:[%s2537_s10] sm:$0xff]  }
 0x578   : > { %v1892_v37 = vpop.f32.mrf.mxu0  ;;  %v1897_v38 = vpop.f32.mrf.mxu1  ;;  %v1754_v35 = vld [vmem:[%s2536_s9] ss:$0 sm:$0xff] }
 0x579   : > { %1920 = vmatmul.mubr.msk.bf16.vlgmr.msra.gmra.mxu1 %vm768_vm4, %v1210_v36 }
 0x57a   : > { %v1204_v40 = vpop.f32.mrf.mxu1  ;;  %1947 = vmatprep.mubr.msk.bf16.mxu1 %vm2101_vm1, %v2100_v11  ;;  %1932 = vmatpush3.bf16.msra.mxu1 %v2004_v27 }
 0x57b   : > { %1933 = vmatprep.subr.bf16.mxu1 %v2100_v11 }
 0x57c   : > { %v1898_v39 = vpop.f32.mrf.mxu1 }
 0x57e   : > { %1934 = vmatpush3.bf16.msra.mxu1 %v2005_v28 }
 0x57f   : > { %1935 = vmatprep.subr.bf16.mxu1 %v2100_v11 }
 0x582   : > { %1936 = vmatpush3.bf16.msra.mxu1 %v2006_v29 }
 0x583   : > { %1937 = vmatprep.subr.bf16.mxu1 %v2100_v11 }
 0x586   : > { %1938 = vmatpush3.bf16.msra.mxu1 %v2007_v30 }
 0x587   : > { %1939 = vmatprep.subr.bf16.mxu1 %v2100_v11 }
 0x58a   : > { %1940 = vmatpush3.bf16.msra.mxu1 %v2008_v31 }
 0x58b   : > { %1941 = vmatprep.subr.bf16.mxu1 %v2100_v11 }
 0x58e   : > { %1942 = vmatpush3.bf16.msra.mxu1 %v2009_v32 }
 0x58f   : > { %1943 = vmatprep.subr.bf16.mxu1 %v2100_v11 }
 0x592   : > { %1944 = vmatpush3.bf16.msra.mxu1 %v2010_v33 }
 0x593   : > { %1945 = vmatprep.subr.bf16.mxu1 %v2100_v11 }
 0x596   : > { %1946 = vmatpush3.bf16.msra.mxu1 %v2011_v34 }
 0x625   : > { %v1255_v41 = vpop.f32.mrf.mxu0 }
 0x626   : > { %v1399_v51 = vsel %vm467_vm0, %v1255_v41, 0.0 }
 0x627   : > { %v1903_v42 = vpop.f32.mrf.mxu0 }
 0x629   : > { %v1258_v43 = vpop.f32.mrf.mxu0 }
 0x62b   : > { %v1904_v44 = vpop.f32.mrf.mxu0 }
 0x62d   : > { %v1301_v45 = vpop.f32.mrf.mxu1 }
 0x62e   : > { %v1400_v49 = vsel %vm467_vm0, %v1301_v45, 0.0 }
 0x62f   : > { %v1909_v46 = vpop.f32.mrf.mxu1  ;;  %v1401_v53 = vadd.f32 %v1400_v49, %v1399_v51  ;;  %v1766_v51 = vld [vmem:[%s2538_s11] ss:$0 sm:$0xff] }
 0x631   : > { %v1304_v47 = vpop.f32.mrf.mxu1 }
 0x633   : > { %v1910_v48 = vpop.f32.mrf.mxu1 }
 0x635   : > { %v1347_v50 = vpop.f32.mrf.mxu0 }
 0x636   : > { %v1402_v52 = vsel %vm467_vm0, %v1347_v50, 0.0 }
 0x637   : > { %v1915_v55 = vpop.f32.mrf.mxu0  ;;  %v1403_v56 = vadd.f32 %v1402_v52, %v1401_v53 }
 0x639   : > { %v1350_v57 = vpop.f32.mrf.mxu0  ;;  %v1393_v59 = vpop.f32.mrf.mxu1 }
 0x63a   : > { %v1404_v60 = vsel %vm467_vm0, %v1393_v59, 0.0 }
 0x63b   : > { %v1405_v61 = vadd.f32 %v1404_v60, %v1403_v56  ;;  %v1916_v62 = vpop.f32.mrf.mxu0  ;;  %v1921_v63 = vpop.f32.mrf.mxu1 }
 0x63d   : > { %v1406_v0 = vadd.f32 %v1405_v61, %v2236_v2  ;;  %v1396_v1 = vpop.f32.mrf.mxu1  ;;  %v2002_v2 = vld [vmem:[%s2535_s8 + $0x8] sm:$0xff]  }
 0x63e   : > { %1924 = vmatpush3.bf16.msra.mxu0 %v2002_v2 }
 0x63f   : > { %v1922_v54 = vpop.f32.mrf.mxu1  ;;  %v2422_v3 = vadd.f32 %v1751_v58, %v1406_v0  ;;  %1925 = vmatprep.subr.bf16.mxu0 %v2100_v11 }
 0x641   : > { %v1415_v4 = vsel %vm467_vm0, %v2422_v3, 0.0 }
 0x642   : > { %1416 = vadd.xlane.f32.xlu1 %v1415_v4  ;;  %1926 = vmatpush3.bf16.msra.mxu0 %v2003_v10 }
 0x6cb   : > { %v1417_v5 = vpop.xlane.xlu1 %1416 }
 0x6cc   : > { %v1418_v6 = vmul.f32 0.03125, %v1417_v5 }
 0x6ce   : > { %v1419_v7 = vsub.f32 %v2422_v3, %v1418_v6 }
 0x6d0   : > { %v1420_v8 = vmul.f32 %v1419_v7, %v1419_v7  ;;  %v1439_v21 = vmul.f32 %v1752_v20, %v1419_v7 }
 0x6d2   : > { %v1421_v9 = vsel %vm467_vm0, %v1420_v8, 0.0 }
 0x6d3   : > { %1422 = vadd.xlane.f32.xlu0 %v1421_v9 }
 0x75c   : > { %v1423_v12 = vpop.xlane.xlu0 %1422 }
 0x75d   : > { %v1424_v13 = vmul.f32 0.032258064, %v1423_v12 }
 0x75f   : > { %2032 = vrsqrt.f32 %v1424_v13  ;;  %vm1427_vm6 = vcmp.eq.f32.partialorder %v1424_v13, inf  ;;  %v1430_v16 = vand.u32 2147483648, %v1424_v13  ;;  %vm1429_vm7 = vcmp.eq.f32.partialorder %v1424_v13, 0.0 }
 0x76c   : > { %v2033_v14 = vpop.eup %2032 }
 0x76d   : > { %v1426_v15 = vmul.f32 %v2033_v14, %v1424_v13 }
 0x76f   : > { %v1428_v17 = vsel %vm1427_vm6, %v1424_v13, %v1426_v15 }
 0x770   : > { %v1431_v18 = vsel %vm1429_vm7, %v1430_v16, %v1428_v17 }
 0x771   : > { %v1440_v19 = vadd.f32 1e-06, %v1431_v18 }
 0x773   : > { %2034 = vrcp.f32 %v1440_v19 }
 0x780   : > { %v2035_v22 = vpop.eup %2034 }
 0x781   : > { %v1442_v24 = vmul.f32 %v2035_v22, %v1439_v21 }
 0x783   : > { %v1450_v25 = vadd.f32 %v1753_v23, %v1442_v24 }
 0x785   : > { %v1451_v26 = vpack.c.bf16 %v1450_v25, %v1450_v25 }
 0x787   : > { %1928 = vmatmul.mubr.msk.bf16.vlgmr.msra.gmra.mxu0 %vm467_vm0, %v1451_v26 }
 0x847   : > { %v1512_v36 = vpop.f32.mrf.mxu0 }
 0x848   : > { %v1513_v37 = vadd.f32 %v1754_v35, %v1512_v36 }
 0x849   : > { %v1929_v38 = vpop.f32.mrf.mxu0 }
 0x84a   : > { %v1519_v40 = vmul.f32 0.044715, %v1513_v37  ;;  %v1518_v11 = vmul.f32 0.5, %v1513_v37 }
 0x84b   : > { %v1515_v39 = vpop.f32.mrf.mxu0 }
 0x84c   : > { %v1520_v41 = vmul.f32 %v1519_v40, %v1513_v37 }
 0x84d   : > { %v1930_v42 = vpop.f32.mrf.mxu0 }
 0x84e   : > { %v1521_v43 = vmul.f32 %v1520_v41, %v1513_v37 }
 0x850   : > { %v1522_v44 = vadd.f32 %v1521_v43, %v1513_v37 }
 0x852   : > { %v1523_v45 = vmul.f32 0.7978846, %v1522_v44 }
 0x854   : > { %2036 = vtanh.f32 %v1523_v45 }
 0x861   : > { %v2037_v46 = vpop.eup %2036 }
 0x862   : > { %v1525_v47 = vadd.f32 1.0, %v2037_v46 }
 0x864   : > { %v1526_v48 = vmul.f32 %v1525_v47, %v1518_v11 }
 0x866   : > { %v1527_v49 = vpack.c.bf16 %v1526_v48, %v1526_v48 }
 0x868   : > { %1948 = vmatmul.mubr.bf16.vlgmr.msra.gmra.mxu1 %v1527_v49 }
 0x928   : > { %v1626_v50 = vpop.f32.mrf.mxu1 }
 0x929   : > { %v1632_v52 = vadd.f32 %v1626_v50, %v2422_v3 }
 0x92a   : > { %v1949_v53 = vpop.f32.mrf.mxu1 }
 0x92b   : > { %v1640_v55 = vadd.f32 %v1766_v51, %v1632_v52 }
 0x92c   : > { %v1629_v56 = vpop.f32.mrf.mxu1 }
 0x92d   : > { %1641 = vst.msk [vmem:[%s458_s21] sm:$0xff] %vm467_vm0, %v1640_v55 }
 0x92e   : > { %v1950_v57 = vpop.f32.mrf.mxu1 }
 0x92f   : > { %2051 = shalt.err (!%p2048_p3)
}
 0x930   : > { %s2052_s20 = scalar_lea.hbm %s2485_s2, 128  ;;  %s2056_s25 = scalar_lea.hbm %s2541_s14, 256 }
 0x931   : > { %p2053_p4 = scmp.ne.s32.totalorder %s2485_s2, %s2052_s20  ;;  %p2057_p9 = scmp.lt.s32.totalorder %s2485_s2, %s2541_s14 }
 0x932   : > { %p2058_p10 = scmp.lt.s32.totalorder %s2056_s25, %s2052_s20 }
 0x933   : > { %p2054_p7 = pnand %p2053_p4, %p2218_p5 }
 0x934   : > { %p2059_p11 = por %p2058_p10, %p2057_p9 }
 0x935   : > { %p2055_p8 = pneg %p2054_p7 }
 0x937   : > { %p2060_p12 = pnand %p2059_p11, %p2055_p8 }
 0x939   : > { %2063 = shalt.err (!%p2060_p12)
}
 0x93a   : > { %1951 = dma.vmem_to_hbm [thread:$0]  (%p2218_p5), %s2487_s0, 128, %s2485_s2, %s1643_s17  }
 0x93b PF: > { %p1957_p13 = scmp.ge.s32.totalorder %s2098_s16, 2  ;;  %s1668_s26 = sand.u32 1, %s2086_s29  }
 0x93c   : > { %s1669_s3 = scalar_lea.sflag [#allocation3], %s1668_s26 }
 0x93d   : > { %p1954_p0 = pnand %p1957_p13, %p2222_p6 }
 0x93f   : > { %p1955_p1 = pneg %p1954_p0 }
 0x941   : > { %2081 = dma.done.wait (%p1955_p1), %s1669_s3, 128  }
 0x942   : > { %2083 = vsyncadd (%p1955_p1), %s1669_s3, 4294967168  ;;  %p24_p2 = scmp.ge.s32.totalorder %s2205_s19, 4   ;;  %s2552_s29 = smov %s2090_s30 }
 0x943   : > { %s2553_s30 = smov %s2094_s15  ;;  %s2554_s15 = smov %s2216_s22 }
 0x944   : > { %s2555_s16 = smov %s2205_s19  ;;  %26 = sbr.rel (!%p24_p2) target bundleno = 8 (0x8), region = 111 }
 0x949   :  { %1674 = vsyncpa [#allocation3], 1 }
 0x94a   :  { %1676 = vsyncpa [#allocation3 + $0x1], 1 }

// kernel: tpu_custom_call.1
= control target key start
LH: loop header
LB: loop body
LE: loop exit
PB: predicated region body
PF: predicated region fallthrough
CT: control target
= control target key end

     0   :  { %s2527_s0 = inlined_call_operand.vmem [shape: f32[2,8,32], index: 0, kind: input, shape index: {}]   ;;  %s2528_s1 = inlined_call_operand.vmem [shape: f32[8,32], index: 1, kind: input, shape index: {}]   ;;  %s2529_s2 = inlined_call_operand.vmem [shape: bf16[4,32,24], index: 2, kind: input, shape index: {}]   ;;  %s2530_s3 = inlined_call_operand.vmem [shape: f32[4,1,24], index: 3, kind: input, shape index: {}]   ;;  %s2531_s4 = inlined_call_operand.vmem [shape: bf16[4,8,32], index: 4, kind: input, shape index: {}]   ;;  %s2532_s5 = inlined_call_operand.vmem [shape: f32[1,32], index: 5, kind: input, shape index: {}]   ;;  %s2533_s6 = inlined_call_operand.vmem [shape: f32[1,32], index: 6, kind: input, shape index: {}]   ;;  %s2534_s7 = inlined_call_operand.vmem [shape: f32[1,32], index: 7, kind: input, shape index: {}]   ;;  %s2535_s8 = inlined_call_operand.vmem [shape: bf16[32,128], index: 8, kind: input, shape index: {}]   ;;  %s2536_s9 = inlined_call_operand.vmem [shape: f32[1,128], index: 9, kind: input, shape index: {}]   ;;  %s2537_s10 = inlined_call_operand.vmem [shape: bf16[128,32], index: 10, kind: input, shape index: {}]   ;;  %s2538_s11 = inlined_call_operand.vmem [shape: f32[1,32], index: 11, kind: input, shape index: {}]   ;;  %s2539_s12 = inlined_call_operand.vmem [shape: f32[1,32], index: 12, kind: input, shape index: {}]   ;;  %s2540_s13 = inlined_call_operand.vmem [shape: f32[1,32], index: 13, kind: input, shape index: {}]   ;;  %s2541_s14 = inlined_call_operand.hbm [shape: f32[2,8,32], index: 14, kind: output, shape index: {}]  }
   0x1   :  { %2542 = sst [smem:[#allocation5_spill]] %s2527_s0 }
   0x2   :  { %2543 = sst [smem:[#allocation6_spill]] %s2528_s1 }
   0x3   :  { %2544 = sst [smem:[#allocation7_spill]] %s2529_s2 }
   0x4   :  { %2545 = sst [smem:[#allocation8_spill]] %s2530_s3 }
   0x5   :  { %19 = vsyncpa [#allocation3], 0 }
   0x6   :  { %21 = vsyncpa [#allocation3 + $0x1], 0  ;;  %s2180_s29 = smov 0   ;;  %s2182_s30 = smov 0  }
   0x7   :  { %s2184_s15 = smov 0   ;;  %s2186_s16 = smov 0  }
   0x8 LB: > { %s2201_s17 = sadd.s32 4294967295, %s2098_s16   ;;  %s1715_s18 = sadd.s32 4294967294, %s2098_s16   ;;  %s2098_s16 = sphi %s2186_s16, %s2555_s16   ;;  %s2094_s15 = sphi %s2184_s15, %s2554_s15   ;;  %s2090_s30 = sphi %s2182_s30, %s2553_s30   ;;  %s2086_s29 = sphi %s2180_s29, %s2552_s29  }
   0x9   : > { %s2205_s19 = sadd.s32 1, %s2098_s16   ;;  %s333_s20 = sadd.s32 1, %s2094_s15 }
   0xa   : > { %s330_s21 = ssub.s32 %s2098_s16, %s2205_s19  ;;  %p343_p0 = scmp.ne.s32.totalorder %s2094_s15, %s2090_s30 }
   0xb   : > { %p331_p1 = scmp.eq.s32.totalorder %s330_s21, 0  ;;  %p344_p2 = scmp.eq.s32.totalorder %s2201_s17, 1 }
   0xc   : > { %p349_p3 = scmp.ne.s32.totalorder %s2090_s30, %s2086_s29  ;;  %p350_p4 = scmp.eq.s32.totalorder %s1715_s18, 1 }
   0xd   : > { %s2216_s22 = scalar_select %p331_p1, %s2094_s15, %s333_s20  }
   0xe   : > { %p2218_p5 = por %p344_p2, %p343_p0  ;;  %p2222_p6 = por %p350_p4, %p349_p3 }
   0xf   : > { %p1718_p7 = scmp.ge.s32.totalorder %s2098_s16, 1  ;;  %p414_p8 = scmp.lt.s32.totalorder %s2098_s16, 3 }
  0x11   : > { %p415_p9 = pnand %p1718_p7, %p414_p8 }
  0x12   : > { %p459_p10 = scmp.lt.s32.totalorder (!%p415_p9), %s2201_s17, 1  ;;  %s2548_s1 = sld [smem:[#allocation6_spill]] (!%p415_p9) }
  0x13   : > { %418 = sbr.rel (%p415_p9) target bundleno = 2363 (0x93b), region = 76  ;;  %s2549_s0 = sld [smem:[#allocation5_spill]] (!%p415_p9) }
  0x14   : > { %s2550_s2 = sld [smem:[#allocation7_spill]] (!%p415_p9)  ;;  %s2102_s20 = smov (!%p415_p9), 120  }
  0x15   : > { %s2551_s3 = sld [smem:[#allocation8_spill]] (!%p415_p9)  ;;  %s2103_s18 = smov (!%p415_p9), 112  }
  0x16   : > { %s456_s27 = sand.u32 (!%p415_p9), 1, %s2090_s30   ;;  %s2104_s28 = smov (!%p415_p9), [#allocation2]  }
  0x18   : > { %s460_s25 = scalar_select %p459_p10, %s2201_s17, 1  ;;  %v465_v0 = vld [vmem:[%s2548_s1] sm:$0xff]  ;;  %vm467_vm0 = vcmask 261120   ;;  %v2100_v11 = vmov 0.0   ;;  %vm2101_vm1 = vmmov 0   ;;  %vm768_vm4 = vcmask 64512  }
  0x19   : > { %1819 = vmatprep.subr.bf16.mxu0 %v2100_v11  ;;  %1843 = vmatprep.subr.bf16.mxu1 %v2100_v11  ;;  %v1721_v22 = vld [vmem:[%s2533_s6] ss:$0 sm:$0xff]  ;;  %vm1019_vm5 = vcmask 1043456  }
  0x1a   : > { %s1720_s26 = sshll.u32 %s460_s25, 3  ;;  %v1994_v9 = vld [vmem:[%s2550_s2 + $0x8] sm:$0xff]   ;;  %v1995_v10 = vld [vmem:[%s2550_s2 + $0x38] sm:$0xff]   ;;  %v1996_v12 = vld [vmem:[%s2550_s2] sm:$0xff]   ;;  %1823 = vmatprep.mubr.msk.bf16.mxu0 %vm2101_vm1, %v2100_v11  ;;  %1847 = vmatprep.mubr.msk.bf16.mxu1 %vm2101_vm1, %v2100_v11 }
  0x1b   : > { %s462_s21 = scalar_lea.vmem %s2549_s0, %s1720_s26  ;;  %1820 = vmatpush3.bf16.msra.mxu0 %v1994_v9  ;;  %1844 = vmatpush3.bf16.msra.mxu1 %v1995_v10  ;;  %v1997_v13 = vld [vmem:[%s2550_s2 + $0x30] sm:$0xff]   ;;  %v1722_v25 = vld [vmem:[%s2534_s7] ss:$0 sm:$0xff]  ;;  %v1998_v28 = vld [vmem:[%s2550_s2 + $0x18] sm:$0xff]   ;;  %s1719_s26 = sshll.u32 %s456_s27, 3 }
  0x1c   : > { %v464_v1 = vld [vmem:[%s462_s21] sm:$0xff]  ;;  %1821 = vmatprep.subr.bf16.mxu0 %v2100_v11  ;;  %1845 = vmatprep.subr.bf16.mxu1 %v2100_v11  ;;  %v1999_v30 = vld [vmem:[%s2550_s2 + $0x10] sm:$0xff]   ;;  %v2000_v31 = vld [vmem:[%s2550_s2 + $0x28] sm:$0xff]   ;;  %s458_s21 = scalar_lea.vmem [#allocation2], %s1719_s26 }
  0x1d   : > { %v2236_v2 = vadd.f32 %v465_v0, %v464_v1  ;;  %v2001_v32 = vld [vmem:[%s2550_s2 + $0x20] sm:$0xff]   ;;  %s1656_s0 = sshll.u32 %s458_s21, 4  ;;  %s2487_s0 = int_to_ptr.vmem [resolvable:$true] %s1656_s0 }
  0x1e   : > { %v1723_v33 = vld [vmem:[%s2551_s3] ss:$0 sm:$0xff]  ;;  %v1724_v44 = vld [vmem:[%s2551_s3 + $0x1] ss:$0 sm:$0xff]  ;;  %v1726_v45 = vld [vmem:[%s2551_s3 + $0x3] ss:$0 sm:$0xff] }
  0x1f   : > { %v468_v3 = vsel %vm467_vm0, %v2236_v2, 0.0  ;;  %1822 = vmatpush3.bf16.msra.mxu0 %v1996_v12  ;;  %1846 = vmatpush3.bf16.msra.mxu1 %v1997_v13  ;;  %v1725_v53 = vld [vmem:[%s2551_s3 + $0x2] ss:$0 sm:$0xff]  ;;  %s2038_s26 = scalar_lea.vmem %s2487_s0, 128 }
  0x20   : > { %469 = vadd.xlane.f32.xlu0 %v468_v3  ;;  %1827 = vmatprep.subr.bf16.mxu0 %v2100_v11  ;;  %p2039_p11 = scmp.ne.s32.totalorder %s2487_s0, %s2038_s26 }
  0x21   : > { %1857 = vmatprep.subr.bf16.mxu1 %v2100_v11 }
  0x22   : > { %p2040_p12 = pnand %p2039_p11, %p2218_p5 }
  0x24   : > { %p2041_p13 = pneg %p2040_p12 }
  0xa9   : > { %v470_v4 = vpop.xlane.xlu0 %469 }
  0xaa   : > { %v472_v5 = vmul.f32 0.03125, %v470_v4 }
  0xac   : > { %v473_v6 = vsub.f32 %v2236_v2, %v472_v5 }
  0xae   : > { %v474_v7 = vmul.f32 %v473_v6, %v473_v6  ;;  %v493_v23 = vmul.f32 %v1721_v22, %v473_v6 }
  0xb0   : > { %v475_v8 = vsel %vm467_vm0, %v474_v7, 0.0 }
  0xb1   : > { %476 = vadd.xlane.f32.xlu0 %v475_v8 }
 0x13a   : > { %v477_v14 = vpop.xlane.xlu0 %476 }
 0x13b   : > { %v478_v15 = vmul.f32 0.032258064, %v477_v14 }
 0x13d   : > { %2012 = vrsqrt.f32 %v478_v15  ;;  %vm481_vm2 = vcmp.eq.f32.partialorder %v478_v15, inf  ;;  %v484_v18 = vand.u32 2147483648, %v478_v15  ;;  %vm483_vm3 = vcmp.eq.f32.partialorder %v478_v15, 0.0 }
 0x14a   : > { %v2013_v16 = vpop.eup %2012 }
 0x14b   : > { %v480_v17 = vmul.f32 %v2013_v16, %v478_v15 }
 0x14d   : > { %v482_v19 = vsel %vm481_vm2, %v478_v15, %v480_v17 }
 0x14e   : > { %v485_v20 = vsel %vm483_vm3, %v484_v18, %v482_v19 }
 0x14f   : > { %v494_v21 = vadd.f32 1e-06, %v485_v20 }
 0x151   : > { %2014 = vrcp.f32 %v494_v21 }
 0x15e   : > { %v2015_v24 = vpop.eup %2014 }
 0x15f   : > { %v496_v26 = vmul.f32 %v2015_v24, %v493_v23 }
 0x161   : > { %v504_v27 = vadd.f32 %v1722_v25, %v496_v26 }
 0x163   : > { %v505_v29 = vpack.c.bf16 %v504_v27, %v504_v27 }
 0x165   : > { %1824 = vmatmul.mubr.msk.bf16.vlgmr.msra.gmra.mxu0 %vm467_vm0, %v505_v29  ;;  %1848 = vmatmul.mubr.msk.bf16.vlgmr.msra.gmra.mxu1 %vm467_vm0, %v505_v29 }
 0x166   : > { %1828 = vmatpush3.bf16.msra.mxu0 %v1998_v28  ;;  %1831 = vmatprep.mubr.msk.bf16.mxu0 %vm2101_vm1, %v2100_v11 }
 0x167   : > { %1829 = vmatprep.subr.bf16.mxu0 %v2100_v11  ;;  %1859 = vmatprep.mubr.msk.bf16.mxu1 %vm2101_vm1, %v2100_v11 }
 0x16a   : > { %1830 = vmatpush3.bf16.msra.mxu0 %v1999_v30 }
 0x16b   : > { %1835 = vmatprep.subr.bf16.mxu0 %v2100_v11 }
 0x16d   : > { %1832 = vmatmul.mubr.msk.bf16.vlgmr.msra.gmra.mxu0 %vm467_vm0, %v505_v29 }
 0x16e   : > { %1836 = vmatpush3.bf16.msra.mxu0 %v2000_v31  ;;  %1839 = vmatprep.mubr.msk.bf16.mxu0 %vm2101_vm1, %v2100_v11 }
 0x16f   : > { %1837 = vmatprep.subr.bf16.mxu0 %v2100_v11 }
 0x172   : > { %1838 = vmatpush3.bf16.msra.mxu0 %v2001_v32 }
 0x173   : > { %1851 = vmatprep.subr.bf16.mxu0 %v2100_v11 }
 0x175   : > { %1840 = vmatmul.mubr.msk.bf16.vlgmr.msra.gmra.mxu0 %vm467_vm0, %v505_v29 }
 0x176   : > { %1853 = vmatprep.mubr.msk.bf16.mxu0 %vm2101_vm1, %v2100_v11 }
 0x225   : > { %v599_v34 = vpop.f32.mrf.mxu0  ;;  %v755_v35 = vpop.f32.mrf.mxu1 }
 0x226   : > { %v600_v36 = vadd.f32 %v1723_v33, %v599_v34  ;;  %v756_v49 = vadd.f32 %v1726_v45, %v755_v35 }
 0x227   : > { %v1825_v37 = vpop.f32.mrf.mxu0  ;;  %v1849_v38 = vpop.f32.mrf.mxu1 }
 0x228   : > { %v2301_v39 = vpack.c.bf16 %v600_v36, %v600_v36  ;;  %v2316_v54 = vpack.c.bf16 %v756_v49, %v756_v49 }
 0x229   : > { %v602_v40 = vpop.f32.mrf.mxu0  ;;  %v758_v41 = vpop.f32.mrf.mxu1 }
 0x22a   : > { %766 = vrot.lane.b32.xlu1 %v2301_v39, %s2102_s20 }
 0x22b   : > { %v1826_v42 = vpop.f32.mrf.mxu0  ;;  %v1850_v43 = vpop.f32.mrf.mxu1 }
 0x22d   : > { %v651_v46 = vpop.f32.mrf.mxu0 }
 0x22e   : > { %v652_v47 = vadd.f32 %v1724_v44, %v651_v46 }
 0x22f   : > { %v1833_v48 = vpop.f32.mrf.mxu0 }
 0x230   : > { %v2310_v50 = vpack.c.bf16 %v652_v47, %v652_v47 }
 0x231   : > { %v654_v51 = vpop.f32.mrf.mxu0 }
 0x232   : > { %816 = vrot.lane.b32.xlu1 %v2310_v50, %s2102_s20 }
 0x233   : > { %v1834_v52 = vpop.f32.mrf.mxu0 }
 0x235   : > { %v703_v55 = vpop.f32.mrf.mxu0 }
 0x236   : > { %v704_v56 = vadd.f32 %v1725_v53, %v703_v55  ;;  %914 = vrot.lane.b32.xlu1 %v2316_v54, %s2102_s20 }
 0x237   : > { %v1841_v57 = vpop.f32.mrf.mxu0 }
 0x238   : > { %v2319_v58 = vpack.c.bf16 %v704_v56, %v704_v56 }
 0x239   : > { %v706_v59 = vpop.f32.mrf.mxu0 }
 0x23a   : > { %865 = vrot.lane.b32.xlu0 %v2319_v58, %s2102_s20  ;;  %s1768_s20 = sshll.u32 %s2201_s17, 7  ;;  %s1643_s17 = scalar_lea.sflag [#allocation3], %s456_s27 }
 0x23b   : > { %v1842_v60 = vpop.f32.mrf.mxu0  ;;  %s2485_s2 = scalar_lea.hbm %s2541_s14, %s1768_s20 }
 0x29c   : > { %v767_v61 = vpop.permute.xlu1 %766 }
 0x29d   : > { %v773_v62 = vsel %vm768_vm4, %v767_v61, 0 }
 0x29e   : > { %1852 = vmatpush3.bf16.xpose.msra.mxu0 %v773_v62 }
 0x29f   : > { %1863 = vmatprep.subr.bf16.mxu0 %v2100_v11 }
 0x2a4   : > { %v817_v63 = vpop.permute.xlu1 %816 }
 0x2a5   : > { %v822_v0 = vsel %vm768_vm4, %v817_v63, 0  ;;  %1854 = vmatmul.mubr.msk.bf16.vlgmr.msra.gmra.mxu0 %vm768_vm4, %v2301_v39 }
 0x2a6   : > { %1858 = vmatpush3.bf16.xpose.msra.mxu1 %v822_v0  ;;  %1865 = vmatprep.mubr.msk.bf16.mxu0 %vm2101_vm1, %v2100_v11 }
 0x2a7   : > { %1869 = vmatprep.subr.bf16.mxu1 %v2100_v11 }
 0x2a8   : > { %v915_v1 = vpop.permute.xlu1 %914 }
 0x2a9   : > { %v920_v4 = vsel %vm768_vm4, %v915_v1, 0 }
 0x2ac   : > { %v866_v3 = vpop.permute.xlu0 %865 }
 0x2ad   : > { %v871_v5 = vsel %vm768_vm4, %v866_v3, 0  ;;  %1860 = vmatmul.mubr.msk.bf16.vlgmr.msra.gmra.mxu1 %vm768_vm4, %v2310_v50 }
 0x2ae   : > { %1864 = vmatpush3.bf16.xpose.msra.mxu0 %v871_v5  ;;  %1870 = vmatpush3.bf16.xpose.msra.mxu1 %v920_v4 }
 0x2af   : > { %1871 = vmatprep.mubr.msk.bf16.mxu1 %vm2101_vm1, %v2100_v11  ;;  %1875 = vmatprep.subr.bf16.mxu0 %v2100_v11 }
 0x2b0   : > { %1881 = vmatprep.subr.bf16.mxu1 %v2100_v11 }
 0x2b5   : > { %1866 = vmatmul.mubr.msk.bf16.vlgmr.msra.gmra.mxu0 %vm768_vm4, %v2319_v58  ;;  %1872 = vmatmul.mubr.msk.bf16.vlgmr.msra.gmra.mxu1 %vm768_vm4, %v2316_v54 }
 0x2b6   : > { %1877 = vmatprep.mubr.msk.bf16.mxu0 %vm2101_vm1, %v2100_v11  ;;  %1883 = vmatprep.mubr.msk.bf16.mxu1 %vm2101_vm1, %v2100_v11 }
 0x365   : > { %v809_v6 = vpop.f32.mrf.mxu0 }
 0x366   : > { %v962_v7 = vmul.f32 0.35355338, %v809_v6 }
 0x367   : > { %v1855_v8 = vpop.f32.mrf.mxu0 }
 0x368   : > { %v966_v9 = vsel %vm768_vm4, %v962_v7, -inf }
 0x369   : > { %967 = vmax.xlane.f32.xlu1 %v966_v9  ;;  %v812_v10 = vpop.f32.mrf.mxu0 }
 0x36b   : > { %v1856_v12 = vpop.f32.mrf.mxu0 }
 0x36d   : > { %v858_v13 = vpop.f32.mrf.mxu1 }
 0x36e   : > { %v963_v14 = vmul.f32 0.35355338, %v858_v13  ;;  %v1211_v13 = vld [vmem:[%s2531_s4] sm:$0xf] }
 0x36f   : > { %v1861_v15 = vpop.f32.mrf.mxu1 }
 0x370   : > { %v969_v16 = vsel %vm768_vm4, %v963_v14, -inf  ;;  %v1212_v15 = vld [vmem:[%s2531_s4 + $0x4] sm:$0xf] }
 0x371   : > { %v861_v17 = vpop.f32.mrf.mxu1  ;;  %970 = vmax.xlane.f32.xlu0 %v969_v16  ;;  %v1265_v16 = vsel %vm1019_vm5, %v1212_v15, 0 }
 0x372   : > { %v1213_v17 = vld [vmem:[%s2531_s4 + $0x8] sm:$0xf] }
 0x373   : > { %v1862_v18 = vpop.f32.mrf.mxu1 }
 0x375   : > { %v907_v19 = vpop.f32.mrf.mxu0  ;;  %v956_v20 = vpop.f32.mrf.mxu1 }
 0x376   : > { %v964_v21 = vmul.f32 0.35355338, %v907_v19  ;;  %v965_v24 = vmul.f32 0.35355338, %v956_v20  ;;  %v1311_v20 = vsel %vm1019_vm5, %v1213_v17, 0 }
 0x377   : > { %v1867_v22 = vpop.f32.mrf.mxu0  ;;  %v1873_v23 = vpop.f32.mrf.mxu1 }
 0x378   : > { %v972_v25 = vsel %vm768_vm4, %v964_v21, -inf  ;;  %v975_v30 = vsel %vm768_vm4, %v965_v24, -inf }
 0x379   : > { %v959_v26 = vpop.f32.mrf.mxu1  ;;  %973 = vmax.xlane.f32.xlu1 %v972_v25  ;;  %v910_v27 = vpop.f32.mrf.mxu0 }
 0x37b   : > { %v1868_v28 = vpop.f32.mrf.mxu0  ;;  %v1874_v29 = vpop.f32.mrf.mxu1 }
 0x37d   : > { %976 = vmax.xlane.f32.xlu1 %v975_v30 }
 0x387   : > { %1014 = vrot.lane.b32.xlu0 %v2301_v39, %s2103_s18 }
 0x38e   : > { %1063 = vrot.lane.b32.xlu1 %v2310_v50, %s2103_s18 }
 0x3f2   : > { %v968_v31 = vpop.xlane.xlu1 %967 }
 0x3f3   : > { %v978_v32 = vsub.f32 %v962_v7, %v968_v31 }
 0x3f5   : > { %v982_v33 = vmul.f32 1.442695, %v978_v32 }
 0x3f7   : > { %2016 = vpow2.f32 %v982_v33 }
 0x3fa   : > { %v971_v34 = vpop.xlane.xlu0 %970 }
 0x3fb   : > { %v979_v35 = vsub.f32 %v963_v14, %v971_v34  ;;  %v1219_v14 = vsel %vm1019_vm5, %v1211_v13, 0 }
 0x3fd   : > { %v984_v36 = vmul.f32 1.442695, %v979_v35 }
 0x3fe   : > { %v1015_v37 = vpop.permute.xlu0 %1014 }
 0x3ff   : > { %2018 = vpow2.f32 %v984_v36  ;;  %v1021_v38 = vsel %vm1019_vm5, %v1015_v37, 0 }
 0x400   : > { %1876 = vmatpush3.bf16.msra.mxu0 %v1021_v38 }
 0x401   : > { %1887 = vmatprep.subr.bf16.mxu0 %v2100_v11 }
 0x402   : > { %v974_v40 = vpop.xlane.xlu1 %973 }
 0x403   : > { %v980_v39 = vsub.f32 %v964_v21, %v974_v40 }
 0x404   : > { %v2017_v41 = vpop.eup %2016 }
 0x405   : > { %v986_v42 = vmul.f32 1.442695, %v980_v39  ;;  %v990_v43 = vsel %vm768_vm4, %v2017_v41, 0.0 }
 0x406   : > { %991 = vadd.xlane.f32.xlu1 %v990_v43  ;;  %v977_v44 = vpop.xlane.xlu1 %976 }
 0x407   : > { %2020 = vpow2.f32 %v986_v42  ;;  %v981_v45 = vsub.f32 %v965_v24, %v977_v44  ;;  %v1214_v24 = vld [vmem:[%s2531_s4 + $0xc] sm:$0xf] }
 0x408   : > { %v1357_v27 = vsel %vm1019_vm5, %v1214_v24, 0 }
 0x409   : > { %v988_v46 = vmul.f32 1.442695, %v981_v45 }
 0x40a   : > { %v1064_v47 = vpop.permute.xlu1 %1063 }
 0x40b   : > { %2022 = vpow2.f32 %v988_v46  ;;  %v1069_v48 = vsel %vm1019_vm5, %v1064_v47, 0 }
 0x40c   : > { %v2019_v49 = vpop.eup %2018  ;;  %1882 = vmatpush3.bf16.msra.mxu1 %v1069_v48 }
 0x40d   : > { %v993_v50 = vsel %vm768_vm4, %v2019_v49, 0.0  ;;  %1893 = vmatprep.subr.bf16.mxu1 %v2100_v11 }
 0x40e   : > { %994 = vadd.xlane.f32.xlu1 %v993_v50 }
 0x414   : > { %v2021_v51 = vpop.eup %2020 }
 0x415   : > { %v996_v52 = vsel %vm768_vm4, %v2021_v51, 0.0 }
 0x416   : > { %997 = vadd.xlane.f32.xlu0 %v996_v52 }
 0x418   : > { %v2023_v53 = vpop.eup %2022 }
 0x419   : > { %v999_v55 = vsel %vm768_vm4, %v2023_v53, 0.0 }
 0x41a   : > { %1000 = vadd.xlane.f32.xlu1 %v999_v55 }
 0x42b   : > { %1111 = vrot.lane.b32.xlu1 %v2319_v58, %s2103_s18 }
 0x42c   : > { %1159 = vrot.lane.b32.xlu0 %v2316_v54, %s2103_s18  ;;  %s2042_s18 = sshll.u32 %s2104_s28, 4  ;;  %s2043_s18 = int_to_ptr.vmem [resolvable:$false] %s2042_s18 }
 0x42d   : > { %s2044_s1 = scalar_lea.vmem %s2043_s18, 256  ;;  %p2045_p0 = scmp.lt.s32.totalorder %s2487_s0, %s2043_s18 }
 0x42e   : > { %p2046_p1 = scmp.lt.s32.totalorder %s2044_s1, %s2038_s26 }
 0x430   : > { %p2047_p2 = por %p2046_p1, %p2045_p0 }
 0x432   : > { %p2048_p3 = pnand %p2047_p2, %p2041_p13 }
 0x48f   : > { %v992_v56 = vpop.xlane.xlu1 %991 }
 0x490   : > { %2024 = vrcp.f32 %v992_v56 }
 0x497   : > { %v995_v57 = vpop.xlane.xlu1 %994 }
 0x498   : > { %2026 = vrcp.f32 %v995_v57 }
 0x49d   : > { %v2025_v59 = vpop.eup %2024 }
 0x49e   : > { %v1006_v60 = vmul.f32 %v2025_v59, %v2017_v41 }
 0x49f   : > { %v998_v61 = vpop.xlane.xlu0 %997 }
 0x4a0   : > { %2028 = vrcp.f32 %v998_v61  ;;  %v1010_v62 = vpack.c.bf16 %v1006_v60, %v1006_v60 }
 0x4a2   : > { %1878 = vmatmul.mubr.msk.bf16.vlgmr.msra.gmra.mxu0 %vm768_vm4, %v1010_v62 }
 0x4a3   : > { %v1001_v63 = vpop.xlane.xlu1 %1000  ;;  %1889 = vmatprep.mubr.msk.bf16.mxu0 %vm2101_vm1, %v2100_v11  ;;  %v1160_v1 = vpop.permute.xlu0 %1159 }
 0x4a4   : > { %2030 = vrcp.f32 %v1001_v63  ;;  %v1165_v5 = vsel %vm1019_vm5, %v1160_v1, 0 }
 0x4a5   : > { %v2027_v58 = vpop.eup %2026 }
 0x4a6   : > { %v1007_v0 = vmul.f32 %v2027_v58, %v2019_v49  ;;  %v1751_v58 = vld [vmem:[%s2532_s5] ss:$0 sm:$0xff] }
 0x4a7   : > { %v1112_v54 = vpop.permute.xlu1 %1111 }
 0x4a8   : > { %v1117_v3 = vsel %vm1019_vm5, %v1112_v54, 0  ;;  %v1011_v4 = vpack.c.bf16 %v1007_v0, %v1007_v0 }
 0x4a9   : > { %1888 = vmatpush3.bf16.msra.mxu0 %v1117_v3 }
 0x4aa   : > { %1884 = vmatmul.mubr.msk.bf16.vlgmr.msra.gmra.mxu1 %vm768_vm4, %v1011_v4  ;;  %1899 = vmatprep.subr.bf16.mxu0 %v2100_v11 }
 0x4ab   : > { %1894 = vmatpush3.bf16.msra.mxu1 %v1165_v5  ;;  %1895 = vmatprep.mubr.msk.bf16.mxu1 %vm2101_vm1, %v2100_v11 }
 0x4ac   : > { %1905 = vmatprep.subr.bf16.mxu1 %v2100_v11 }
 0x4ad   : > { %v2029_v6 = vpop.eup %2028 }
 0x4ae   : > { %v1008_v7 = vmul.f32 %v2029_v6, %v2021_v51 }
 0x4b0   : > { %v1012_v8 = vpack.c.bf16 %v1008_v7, %v1008_v7 }
 0x4b1   : > { %v2031_v9 = vpop.eup %2030 }
 0x4b2   : > { %1890 = vmatmul.mubr.msk.bf16.vlgmr.msra.gmra.mxu0 %vm768_vm4, %v1012_v8  ;;  %v1009_v10 = vmul.f32 %v2031_v9, %v2023_v53 }
 0x4b3   : > { %1901 = vmatprep.mubr.msk.bf16.mxu0 %vm2101_vm1, %v2100_v11  ;;  %1900 = vmatpush3.bf16.msra.mxu0 %v1219_v14 }
 0x4b4   : > { %v1013_v12 = vpack.c.bf16 %v1009_v10, %v1009_v10  ;;  %1911 = vmatprep.subr.bf16.mxu0 %v2100_v11  ;;  %v2003_v10 = vld [vmem:[%s2535_s8] sm:$0xff]  }
 0x4b6   : > { %1896 = vmatmul.mubr.msk.bf16.vlgmr.msra.gmra.mxu1 %vm768_vm4, %v1013_v12 }
 0x4b7   : > { %1907 = vmatprep.mubr.msk.bf16.mxu1 %vm2101_vm1, %v2100_v11  ;;  %1906 = vmatpush3.bf16.msra.mxu1 %v1265_v16 }
 0x4b8   : > { %1917 = vmatprep.subr.bf16.mxu1 %v2100_v11 }
 0x562   : > { %v1057_v18 = vpop.f32.mrf.mxu0 }
 0x563   : > { %v1207_v19 = vpack.c.bf16 %v1057_v18, %v1057_v18 }
 0x564   : > { %v1879_v21 = vpop.f32.mrf.mxu0 }
 0x565   : > { %1902 = vmatmul.mubr.msk.bf16.vlgmr.msra.gmra.mxu0 %vm768_vm4, %v1207_v19 }
 0x566   : > { %v1060_v22 = vpop.f32.mrf.mxu0  ;;  %1912 = vmatpush3.bf16.msra.mxu0 %v1311_v20  ;;  %1913 = vmatprep.mubr.msk.bf16.mxu0 %vm2101_vm1, %v2100_v11  ;;  %v1752_v20 = vld [vmem:[%s2539_s12] ss:$0 sm:$0xff] }
 0x567   : > { %1923 = vmatprep.subr.bf16.mxu0 %v2100_v11 }
 0x568   : > { %v1880_v23 = vpop.f32.mrf.mxu0 }
 0x569   : > { %v1753_v23 = vld [vmem:[%s2540_s13] ss:$0 sm:$0xff] }
 0x56a   : > { %v1105_v25 = vpop.f32.mrf.mxu1 }
 0x56b   : > { %v1208_v26 = vpack.c.bf16 %v1105_v25, %v1105_v25 }
 0x56c   : > { %v1885_v28 = vpop.f32.mrf.mxu1 }
 0x56d   : > { %1908 = vmatmul.mubr.msk.bf16.vlgmr.msra.gmra.mxu1 %vm768_vm4, %v1208_v26  ;;  %v2005_v28 = vld [vmem:[%s2537_s10 + $0x30] sm:$0xff]  }
 0x56e   : > { %v1108_v29 = vpop.f32.mrf.mxu1  ;;  %1918 = vmatpush3.bf16.msra.mxu1 %v1357_v27  ;;  %1919 = vmatprep.mubr.msk.bf16.mxu1 %vm2101_vm1, %v2100_v11  ;;  %v2004_v27 = vld [vmem:[%s2537_s10 + $0x38] sm:$0xff]  }
 0x56f   : > { %1931 = vmatprep.subr.bf16.mxu1 %v2100_v11  ;;  %v2006_v29 = vld [vmem:[%s2537_s10 + $0x28] sm:$0xff]  }
 0x570   : > { %v1886_v30 = vpop.f32.mrf.mxu1 }
 0x571   : > { %v2007_v30 = vld [vmem:[%s2537_s10 + $0x20] sm:$0xff]  }
 0x572   : > { %v1153_v31 = vpop.f32.mrf.mxu0 }
 0x573   : > { %v1209_v32 = vpack.c.bf16 %v1153_v31, %v1153_v31  ;;  %v2008_v31 = vld [vmem:[%s2537_s10 + $0x18] sm:$0xff]  }
 0x574   : > { %v1891_v33 = vpop.f32.mrf.mxu0 }
 0x575   : > { %1914 = vmatmul.mubr.msk.bf16.vlgmr.msra.gmra.mxu0 %vm768_vm4, %v1209_v32  ;;  %v2009_v32 = vld [vmem:[%s2537_s10 + $0x10] sm:$0xff]   ;;  %v2010_v33 = vld [vmem:[%s2537_s10 + $0x8] sm:$0xff]  }
 0x576   : > { %v1156_v34 = vpop.f32.mrf.mxu0  ;;  %v1201_v35 = vpop.f32.mrf.mxu1  ;;  %1927 = vmatprep.mubr.msk.bf16.mxu0 %vm2101_vm1, %v2100_v11 }
 0x577   : > { %v1210_v36 = vpack.c.bf16 %v1201_v35, %v1201_v35  ;;  %v2011_v34 = vld [vmem:[%s2537_s10] sm:$0xff]  }
 0x578   : > { %v1892_v37 = vpop.f32.mrf.mxu0  ;;  %v1897_v38 = vpop.f32.mrf.mxu1  ;;  %v1754_v35 = vld [vmem:[%s2536_s9] ss:$0 sm:$0xff] }
 0x579   : > { %1920 = vmatmul.mubr.msk.bf16.vlgmr.msra.gmra.mxu1 %vm768_vm4, %v1210_v36 }
 0x57a   : > { %v1204_v40 = vpop.f32.mrf.mxu1  ;;  %1947 = vmatprep.mubr.msk.bf16.mxu1 %vm2101_vm1, %v2100_v11  ;;  %1932 = vmatpush3.bf16.msra.mxu1 %v2004_v27 }
 0x57b   : > { %1933 = vmatprep.subr.bf16.mxu1 %v2100_v11 }
 0x57c   : > { %v1898_v39 = vpop.f32.mrf.mxu1 }
 0x57e   : > { %1934 = vmatpush3.bf16.msra.mxu1 %v2005_v28 }
 0x57f   : > { %1935 = vmatprep.subr.bf16.mxu1 %v2100_v11 }
 0x582   : > { %1936 = vmatpush3.bf16.msra.mxu1 %v2006_v29 }
 0x583   : > { %1937 = vmatprep.subr.bf16.mxu1 %v2100_v11 }
 0x586   : > { %1938 = vmatpush3.bf16.msra.mxu1 %v2007_v30 }
 0x587   : > { %1939 = vmatprep.subr.bf16.mxu1 %v2100_v11 }
 0x58a   : > { %1940 = vmatpush3.bf16.msra.mxu1 %v2008_v31 }
 0x58b   : > { %1941 = vmatprep.subr.bf16.mxu1 %v2100_v11 }
 0x58e   : > { %1942 = vmatpush3.bf16.msra.mxu1 %v2009_v32 }
 0x58f   : > { %1943 = vmatprep.subr.bf16.mxu1 %v2100_v11 }
 0x592   : > { %1944 = vmatpush3.bf16.msra.mxu1 %v2010_v33 }
 0x593   : > { %1945 = vmatprep.subr.bf16.mxu1 %v2100_v11 }
 0x596   : > { %1946 = vmatpush3.bf16.msra.mxu1 %v2011_v34 }
 0x625   : > { %v1255_v41 = vpop.f32.mrf.mxu0 }
 0x626   : > { %v1399_v51 = vsel %vm467_vm0, %v1255_v41, 0.0 }
 0x627   : > { %v1903_v42 = vpop.f32.mrf.mxu0 }
 0x629   : > { %v1258_v43 = vpop.f32.mrf.mxu0 }
 0x62b   : > { %v1904_v44 = vpop.f32.mrf.mxu0 }
 0x62d   : > { %v1301_v45 = vpop.f32.mrf.mxu1 }
 0x62e   : > { %v1400_v49 = vsel %vm467_vm0, %v1301_v45, 0.0 }
 0x62f   : > { %v1909_v46 = vpop.f32.mrf.mxu1  ;;  %v1401_v53 = vadd.f32 %v1400_v49, %v1399_v51  ;;  %v1766_v51 = vld [vmem:[%s2538_s11] ss:$0 sm:$0xff] }
 0x631   : > { %v1304_v47 = vpop.f32.mrf.mxu1 }
 0x633   : > { %v1910_v48 = vpop.f32.mrf.mxu1 }
 0x635   : > { %v1347_v50 = vpop.f32.mrf.mxu0 }
 0x636   : > { %v1402_v52 = vsel %vm467_vm0, %v1347_v50, 0.0 }
 0x637   : > { %v1915_v55 = vpop.f32.mrf.mxu0  ;;  %v1403_v56 = vadd.f32 %v1402_v52, %v1401_v53 }
 0x639   : > { %v1350_v57 = vpop.f32.mrf.mxu0  ;;  %v1393_v59 = vpop.f32.mrf.mxu1 }
 0x63a   : > { %v1404_v60 = vsel %vm467_vm0, %v1393_v59, 0.0 }
 0x63b   : > { %v1405_v61 = vadd.f32 %v1404_v60, %v1403_v56  ;;  %v1916_v62 = vpop.f32.mrf.mxu0  ;;  %v1921_v63 = vpop.f32.mrf.mxu1 }
 0x63d   : > { %v1406_v0 = vadd.f32 %v1405_v61, %v2236_v2  ;;  %v1396_v1 = vpop.f32.mrf.mxu1  ;;  %v2002_v2 = vld [vmem:[%s2535_s8 + $0x8] sm:$0xff]  }
 0x63e   : > { %1924 = vmatpush3.bf16.msra.mxu0 %v2002_v2 }
 0x63f   : > { %v1922_v54 = vpop.f32.mrf.mxu1  ;;  %v2422_v3 = vadd.f32 %v1751_v58, %v1406_v0  ;;  %1925 = vmatprep.subr.bf16.mxu0 %v2100_v11 }
 0x641   : > { %v1415_v4 = vsel %vm467_vm0, %v2422_v3, 0.0 }
 0x642   : > { %1416 = vadd.xlane.f32.xlu1 %v1415_v4  ;;  %1926 = vmatpush3.bf16.msra.mxu0 %v2003_v10 }
 0x6cb   : > { %v1417_v5 = vpop.xlane.xlu1 %1416 }
 0x6cc   : > { %v1418_v6 = vmul.f32 0.03125, %v1417_v5 }
 0x6ce   : > { %v1419_v7 = vsub.f32 %v2422_v3, %v1418_v6 }
 0x6d0   : > { %v1420_v8 = vmul.f32 %v1419_v7, %v1419_v7  ;;  %v1439_v21 = vmul.f32 %v1752_v20, %v1419_v7 }
 0x6d2   : > { %v1421_v9 = vsel %vm467_vm0, %v1420_v8, 0.0 }
 0x6d3   : > { %1422 = vadd.xlane.f32.xlu0 %v1421_v9 }
 0x75c   : > { %v1423_v12 = vpop.xlane.xlu0 %1422 }
 0x75d   : > { %v1424_v13 = vmul.f32 0.032258064, %v1423_v12 }
 0x75f   : > { %2032 = vrsqrt.f32 %v1424_v13  ;;  %vm1427_vm6 = vcmp.eq.f32.partialorder %v1424_v13, inf  ;;  %v1430_v16 = vand.u32 2147483648, %v1424_v13  ;;  %vm1429_vm7 = vcmp.eq.f32.partialorder %v1424_v13, 0.0 }
 0x76c   : > { %v2033_v14 = vpop.eup %2032 }
 0x76d   : > { %v1426_v15 = vmul.f32 %v2033_v14, %v1424_v13 }
 0x76f   : > { %v1428_v17 = vsel %vm1427_vm6, %v1424_v13, %v1426_v15 }
 0x770   : > { %v1431_v18 = vsel %vm1429_vm7, %v1430_v16, %v1428_v17 }
 0x771   : > { %v1440_v19 = vadd.f32 1e-06, %v1431_v18 }
 0x773   : > { %2034 = vrcp.f32 %v1440_v19 }
 0x780   : > { %v2035_v22 = vpop.eup %2034 }
 0x781   : > { %v1442_v24 = vmul.f32 %v2035_v22, %v1439_v21 }
 0x783   : > { %v1450_v25 = vadd.f32 %v1753_v23, %v1442_v24 }
 0x785   : > { %v1451_v26 = vpack.c.bf16 %v1450_v25, %v1450_v25 }
 0x787   : > { %1928 = vmatmul.mubr.msk.bf16.vlgmr.msra.gmra.mxu0 %vm467_vm0, %v1451_v26 }
 0x847   : > { %v1512_v36 = vpop.f32.mrf.mxu0 }
 0x848   : > { %v1513_v37 = vadd.f32 %v1754_v35, %v1512_v36 }
 0x849   : > { %v1929_v38 = vpop.f32.mrf.mxu0 }
 0x84a   : > { %v1519_v40 = vmul.f32 0.044715, %v1513_v37  ;;  %v1518_v11 = vmul.f32 0.5, %v1513_v37 }
 0x84b   : > { %v1515_v39 = vpop.f32.mrf.mxu0 }
 0x84c   : > { %v1520_v41 = vmul.f32 %v1519_v40, %v1513_v37 }
 0x84d   : > { %v1930_v42 = vpop.f32.mrf.mxu0 }
 0x84e   : > { %v1521_v43 = vmul.f32 %v1520_v41, %v1513_v37 }
 0x850   : > { %v1522_v44 = vadd.f32 %v1521_v43, %v1513_v37 }
 0x852   : > { %v1523_v45 = vmul.f32 0.7978846, %v1522_v44 }
 0x854   : > { %2036 = vtanh.f32 %v1523_v45 }
 0x861   : > { %v2037_v46 = vpop.eup %2036 }
 0x862   : > { %v1525_v47 = vadd.f32 1.0, %v2037_v46 }
 0x864   : > { %v1526_v48 = vmul.f32 %v1525_v47, %v1518_v11 }
 0x866   : > { %v1527_v49 = vpack.c.bf16 %v1526_v48, %v1526_v48 }
 0x868   : > { %1948 = vmatmul.mubr.bf16.vlgmr.msra.gmra.mxu1 %v1527_v49 }
 0x928   : > { %v1626_v50 = vpop.f32.mrf.mxu1 }
 0x929   : > { %v1632_v52 = vadd.f32 %v1626_v50, %v2422_v3 }
 0x92a   : > { %v1949_v53 = vpop.f32.mrf.mxu1 }
 0x92b   : > { %v1640_v55 = vadd.f32 %v1766_v51, %v1632_v52 }
 0x92c   : > { %v1629_v56 = vpop.f32.mrf.mxu1 }
 0x92d   : > { %1641 = vst.msk [vmem:[%s458_s21] sm:$0xff] %vm467_vm0, %v1640_v55 }
 0x92e   : > { %v1950_v57 = vpop.f32.mrf.mxu1 }
 0x92f   : > { %2051 = shalt.err (!%p2048_p3)
}
 0x930   : > { %s2052_s20 = scalar_lea.hbm %s2485_s2, 128  ;;  %s2056_s25 = scalar_lea.hbm %s2541_s14, 256 }
 0x931   : > { %p2053_p4 = scmp.ne.s32.totalorder %s2485_s2, %s2052_s20  ;;  %p2057_p9 = scmp.lt.s32.totalorder %s2485_s2, %s2541_s14 }
 0x932   : > { %p2058_p10 = scmp.lt.s32.totalorder %s2056_s25, %s2052_s20 }
 0x933   : > { %p2054_p7 = pnand %p2053_p4, %p2218_p5 }
 0x934   : > { %p2059_p11 = por %p2058_p10, %p2057_p9 }
 0x935   : > { %p2055_p8 = pneg %p2054_p7 }
 0x937   : > { %p2060_p12 = pnand %p2059_p11, %p2055_p8 }
 0x939   : > { %2063 = shalt.err (!%p2060_p12)
}
 0x93a   : > { %1951 = dma.vmem_to_hbm [thread:$0]  (%p2218_p5), %s2487_s0, 128, %s2485_s2, %s1643_s17  }
 0x93b PF: > { %p1957_p13 = scmp.ge.s32.totalorder %s2098_s16, 2  ;;  %s1668_s26 = sand.u32 1, %s2086_s29  }
 0x93c   : > { %s1669_s3 = scalar_lea.sflag [#allocation3], %s1668_s26 }
 0x93d   : > { %p1954_p0 = pnand %p1957_p13, %p2222_p6 }
 0x93f   : > { %p1955_p1 = pneg %p1954_p0 }
 0x941   : > { %2081 = dma.done.wait (%p1955_p1), %s1669_s3, 128  }
 0x942   : > { %2083 = vsyncadd (%p1955_p1), %s1669_s3, 4294967168  ;;  %p24_p2 = scmp.ge.s32.totalorder %s2205_s19, 4   ;;  %s2552_s29 = smov %s2090_s30 }
 0x943   : > { %s2553_s30 = smov %s2094_s15  ;;  %s2554_s15 = smov %s2216_s22 }
 0x944   : > { %s2555_s16 = smov %s2205_s19  ;;  %26 = sbr.rel (!%p24_p2) target bundleno = 8 (0x8), region = 111 }
 0x949   :  { %1674 = vsyncpa [#allocation3], 1 }
 0x94a   :  { %1676 = vsyncpa [#allocation3 + $0x1], 1 }

</bundles_post_ra>
